<compile_context>
chip_gen: v7x
topology: tpu7x:2x2x1
jax: 0.10.0
libtpu: 0.0.40
codegen_flags: <defaults>
</compile_context>

<pallas_src>
import functools

import jax
import jax.numpy as jnp
import numpy as np
from jax.experimental import pallas as pl
from jax.experimental.pallas import tpu as pltpu


def _gcn_adj_kernel(ids_ref, cnt_ref, adj_ref, h_ref, out_ref, *, tk, max_k):
    """out[i] = relu(sum_k adj[i, ids[i,k]] @ h[ids[i,k]]) with f32 accumulation.

    out_ref (tm, od, f32) is VMEM-resident across the k axis (its index_map ignores k),
    so it doubles as the accumulator.  h_ref holds the whole (n, od) bf16 matrix
    resident in VMEM (constant index_map); the matching (tk, od) slice is taken here.
    """
    i = pl.program_id(0)
    k = pl.program_id(1)

    @pl.when(k == 0)
    def _():
        out_ref[...] = jnp.zeros_like(out_ref)

    # Only accumulate real (nonzero) adjacency column blocks; padded steps reuse the
    # previous block index (no new DMA) and are skipped here.
    @pl.when(k < cnt_ref[i])
    def _():
        col = ids_ref[i * max_k + k]
        row_start = pl.multiple_of(col * tk, tk)
        h_blk = h_ref[pl.ds(row_start, tk), :]
        out_ref[...] += jnp.dot(
            adj_ref[...], h_blk, preferred_element_type=jnp.float32
        )

    @pl.when(k == pl.num_programs(1) - 1)
    def _():
        out_ref[...] = jnp.maximum(out_ref[...], 0.0)


def build_block_metadata(adj_np, tm, tk):
    """Per row-tile list of nonzero (tm, tk) column-block indices (host-side, numpy).

    Returns (flat int32 ids of shape [num_row_tiles * max_k], int32 counts of shape
    [num_row_tiles]).  Padded entries repeat the last valid block (same block index on
    consecutive steps -> no DMA; skipped by the kernel via pl.when).
    """
    n = adj_np.shape[0]
    assert n % tm == 0 and n % tk == 0
    nrt, nkb = n // tm, n // tk
    blocks = adj_np.reshape(nrt, tm, nkb, tk)
    nz = np.any(blocks != 0, axis=(1, 3))                 # (nrt, nkb)
    counts = nz.sum(axis=1).astype(np.int32)              # (nrt,)
    max_k = max(int(counts.max()), 1)
    ids = np.zeros((nrt, max_k), dtype=np.int32)
    for i in range(nrt):
        cols = np.flatnonzero(nz[i])
        if cols.size:
            ids[i, : cols.size] = cols
            ids[i, cols.size:] = cols[-1]
    return jnp.asarray(ids.reshape(-1)), jnp.asarray(counts)


def prepare_adjacency(adj, tm, tk):
    """One-time per-graph preprocessing: bf16 adjacency + nonzero-block metadata.

    Keeping adj persistently in bf16 removes a full N^2 read+write HBM pass from every
    forward call (the kernel is adjacency-HBM-bound).  The metadata is tied to (tm, tk);
    the same tile sizes must be passed to graph_conv_sparse.
    """
    adj_np = np.asarray(adj, dtype=np.float32)
    block_ids, block_counts = build_block_metadata(adj_np, tm, tk)
    # TODO(synk): in the real model adj arrives as torch.sparse; build the bf16 blocks
    # and metadata directly from its (row, col) indices instead of densifying here.
    return jnp.asarray(adj_np, dtype=jnp.bfloat16), block_ids, block_counts


@functools.partial(jax.jit, static_argnames=("tm", "tk"))
def graph_conv_sparse(x, adj_bf16, weight, block_ids, block_counts, *, tm, tk):
    """relu(adj @ (x @ weight)) with a block-sparse-aware Pallas adjacency matmul.

    (tm, tk) MUST match the values used in prepare_adjacency(); no silent clamping.
    Recommended for real graphs: tm ~ 1024-2048 (>= 2 row tiles for v7x megacore),
    tk ~ 1024.
    """
    n, _ = x.shape
    output_dim = weight.shape[1]
    assert adj_bf16.shape == (n, n)
    assert adj_bf16.dtype == jnp.bfloat16, "pass adj through prepare_adjacency() once"
    assert n % tm == 0 and n % tk == 0, "N must be divisible by tm and tk"
    num_row_tiles = n // tm
    assert block_counts.shape == (num_row_tiles,), "metadata built with different tm"
    assert block_ids.shape[0] % num_row_tiles == 0, "metadata built with different tm"
    max_k = block_ids.shape[0] // num_row_tiles

    # Lane-dense output: pad output_dim up to a multiple of 128, slice back at the end.
    od_pad = (-output_dim) % 128
    w = weight if od_pad == 0 else jnp.pad(weight, ((0, 0), (0, od_pad)))
    od = output_dim + od_pad

    # Hoisted small matmul (negligible FLOPs vs adj @ h); h held in VMEM as bf16.
    h = jnp.dot(x, w, preferred_element_type=jnp.float32).astype(jnp.bfloat16)

    grid = (num_row_tiles, max_k)

    # VMEM budget: double-buffered adj blocks + (conservatively double-counted)
    # resident h + two output-block slots + slack, capped below physical capacity.
    adj_block_bytes = tm * tk * 2
    h_bytes = n * od * 2
    out_block_bytes = tm * od * 4
    vmem_needed = 2 * adj_block_bytes + 2 * h_bytes + 2 * out_block_bytes + (2 << 20)
    try:
        vmem_cap = int(pltpu.get_tpu_info().vmem_capacity_bytes)
    except Exception:
        vmem_cap = 64 << 20  # v7x-safe fallback
    vmem_limit = int(min(max(vmem_needed, 32 << 20), int(vmem_cap * 0.85)))

    kernel = functools.partial(_gcn_adj_kernel, tk=tk, max_k=max_k)

    out = pl.pallas_call(
        kernel,
        out_shape=jax.ShapeDtypeStruct((n, od), jnp.float32),
        grid_spec=pltpu.PrefetchScalarGridSpec(
            num_scalar_prefetch=2,
            grid=grid,
            in_specs=[
                # adj block: row tile i, column block chosen from prefetched ids.
                pl.BlockSpec(
                    (tm, tk), lambda i, k, ids, cnt: (i, ids[i * max_k + k])
                ),
                # whole h stays VMEM-resident: constant block index -> DMA'd once.
                pl.BlockSpec((n, od), lambda i, k, ids, cnt: (0, 0)),
            ],
            out_specs=pl.BlockSpec((tm, od), lambda i, k, ids, cnt: (i, 0)),
        ),
        compiler_params=pltpu.CompilerParams(
            dimension_semantics=("parallel", "arbitrary"),
            vmem_limit_bytes=vmem_limit,
        ),
    )(block_ids, block_counts, adj_bf16, h)

    out = out[:, :output_dim] if od_pad else out
    return out.astype(x.dtype)


def glorot_init(key, input_dim, output_dim, dtype=jnp.float32):
    init_range = jnp.sqrt(6.0 / (input_dim + output_dim))
    u = jax.random.uniform(key, (input_dim, output_dim), dtype=dtype)
    return u * 2.0 * init_range - init_range


if __name__ == "__main__":
    # Shapes consistent with the module's forward: x [N, input_dim], adj [N, N],
    # weight [input_dim, output_dim].
    N, INPUT_DIM, OUTPUT_DIM = 1024, 64, 128
    TM, TK = 512, 512  # 2 row tiles (>= 2 for v7x megacore) x 2 column blocks

    key = jax.random.PRNGKey(0)
    kx, kadj, kw = jax.random.split(key, 3)

    x = jax.random.normal(kx, (N, INPUT_DIM), dtype=jnp.float32)

    # Block-sparse normalized-adjacency-like matrix; one (TM, TK) block is exactly zero
    # so the scalar-prefetch block-skip path is exercised.
    dense = jax.random.uniform(kadj, (N, N), dtype=jnp.float32) / N
    block_mask = np.array([[1, 0],
                           [1, 1]], dtype=np.float32)            # (N//TM, N//TK)
    adj = dense * jnp.asarray(np.kron(block_mask, np.ones((TM, TK), np.float32)))

    weight = glorot_init(kw, INPUT_DIM, OUTPUT_DIM)

    # One-time per-graph preprocessing (bf16 cast + block metadata), kept OUT of the
    # per-call hot path.
    adj_bf16, block_ids, block_counts = prepare_adjacency(adj, TM, TK)

    out = graph_conv_sparse(
        x, adj_bf16, weight, block_ids, block_counts, tm=TM, tk=TK
    )
    out = jax.block_until_ready(out)

    # Reference consistent with the kernel's bf16 representation of adj and h.
    h_ref = jnp.dot(x, weight, preferred_element_type=jnp.float32).astype(jnp.bfloat16)
    ref = jnp.maximum(
        jnp.dot(adj_bf16, h_ref, preferred_element_type=jnp.float32), 0.0
    )

    assert out.shape == (N, OUTPUT_DIM)
    assert out.dtype == x.dtype
    assert jnp.allclose(out, ref, atol=1e-3, rtol=1e-3), float(
        jnp.max(jnp.abs(out - ref))
    )

    print("KERNEL_OK")
</pallas_src>

<mosaic_0001>
module attributes {stable_mosaic.version = 11 : i64} {
  func.func @_gcn_adj_kernel(%arg0: i32, %arg1: i32, %arg2: memref<4xi32, #tpu.memory_space<smem>>, %arg3: memref<2xi32, #tpu.memory_space<smem>>, %arg4: memref<512x512xbf16, #tpu.memory_space<vmem>>, %arg5: memref<1024x128xbf16, #tpu.memory_space<vmem>>, %arg6: memref<512x128xf32, #tpu.memory_space<vmem>>) attributes {dimension_semantics = [#tpu.dimension_semantics<parallel>, #tpu.dimension_semantics<arbitrary>], iteration_bounds = array<i64: 2, 2>, scalar_prefetch = 2 : i64, scratch_operands = 0 : i64, tpu.core_type = #tpu.core_type<tc>, window_params = [{transform_indices = @transform_0, window_bounds = array<i64: 512, 512>}, {pipeline_mode = #tpu.pipeline_mode<synchronous>, transform_indices = @transform_1, window_bounds = array<i64: 1024, 128>}, {transform_indices = @transform_2, window_bounds = array<i64: 512, 128>}]} {
    %c0_i32 = arith.constant 0 : i32
    %0 = arith.cmpi eq, %arg1, %c0_i32 : i32
    %1 = arith.extui %0 : i1 to i32
    %c0_i32_0 = arith.constant 0 : i32
    %2 = arith.cmpi ne, %1, %c0_i32_0 : i32
    scf.if %2 {
      %cst = arith.constant 0.000000e+00 : f32
      %11 = vector.broadcast %cst : f32 to vector<512x128xf32>
      %c0 = arith.constant 0 : index
      %c0_3 = arith.constant 0 : index
      %12 = vector.load %arg6[%c0, %c0_3] : memref<512x128xf32, #tpu.memory_space<vmem>>, vector<512x128xf32>
      tpu.vector_store %arg6[%c0, %c0_3], %11 {strides = array<i32>} : memref<512x128xf32, #tpu.memory_space<vmem>>, vector<512x128xf32>,
    } else {
    }
    %3 = arith.index_cast %arg0 : i32 to index
    %4 = memref.load %arg3[%3] : memref<2xi32, #tpu.memory_space<smem>>
    %5 = arith.cmpi slt, %arg1, %4 : i32
    %6 = arith.extui %5 : i1 to i32
    %c0_i32_1 = arith.constant 0 : i32
    %7 = arith.cmpi ne, %6, %c0_i32_1 : i32
    scf.if %7 {
      %c2_i32 = arith.constant 2 : i32
      %11 = arith.muli %arg0, %c2_i32 : i32
      %12 = arith.addi %11, %arg1 : i32
      %13 = arith.index_cast %12 : i32 to index
      %14 = memref.load %arg2[%13] : memref<4xi32, #tpu.memory_space<smem>>
      %c512_i32 = arith.constant 512 : i32
      %15 = arith.muli %14, %c512_i32 : i32
      %16 = tpu.assume_multiple %15, 512 : i32
      %17 = arith.index_cast %16 : i32 to index
      %c0 = arith.constant 0 : index
      %18 = vector.load %arg5[%17, %c0] : memref<1024x128xbf16, #tpu.memory_space<vmem>>, vector<512x128xbf16>
      %c0_3 = arith.constant 0 : index
      %c0_4 = arith.constant 0 : index
      %19 = vector.load %arg6[%c0_3, %c0_4] : memref<512x128xf32, #tpu.memory_space<vmem>>, vector<512x128xf32>
      %c0_5 = arith.constant 0 : index
      %c0_6 = arith.constant 0 : index
      %20 = vector.load %arg4[%c0_5, %c0_6] : memref<512x512xbf16, #tpu.memory_space<vmem>>, vector<512x512xbf16>
      %cst = arith.constant dense<0.000000e+00> : vector<512x128xf32>
      %21 = tpu.matmul %20, %18, %cst {dimension_numbers = #tpu.dot_dimension_numbers<[1], [0], [0], [1], [0, 0, 1, 1], [], []>} : vector<512x512xbf16>, vector<512x128xbf16>, vector<512x128xf32> -> vector<512x128xf32>
      %22 = arith.addf %19, %21 : vector<512x128xf32>
      %c0_7 = arith.constant 0 : index
      %c0_8 = arith.constant 0 : index
      %23 = vector.load %arg6[%c0_7, %c0_8] : memref<512x128xf32, #tpu.memory_space<vmem>>, vector<512x128xf32>
      tpu.vector_store %arg6[%c0_7, %c0_8], %22 {strides = array<i32>} : memref<512x128xf32, #tpu.memory_space<vmem>>, vector<512x128xf32>,
    } else {
    }
    %c1_i32 = arith.constant 1 : i32
    %8 = arith.cmpi eq, %arg1, %c1_i32 : i32
    %9 = arith.extui %8 : i1 to i32
    %c0_i32_2 = arith.constant 0 : i32
    %10 = arith.cmpi ne, %9, %c0_i32_2 : i32
    scf.if %10 {
      %c0 = arith.constant 0 : index
      %c0_3 = arith.constant 0 : index
      %11 = vector.load %arg6[%c0, %c0_3] : memref<512x128xf32, #tpu.memory_space<vmem>>, vector<512x128xf32>
      %cst = arith.constant 0.000000e+00 : f32
      %12 = vector.broadcast %cst : f32 to vector<512x128xf32>
      %13 = arith.maximumf %11, %12 : vector<512x128xf32>
      %c0_4 = arith.constant 0 : index
      %c0_5 = arith.constant 0 : index
      %14 = vector.load %arg6[%c0_4, %c0_5] : memref<512x128xf32, #tpu.memory_space<vmem>>, vector<512x128xf32>
      tpu.vector_store %arg6[%c0_4, %c0_5], %13 {strides = array<i32>} : memref<512x128xf32, #tpu.memory_space<vmem>>, vector<512x128xf32>,
    } else {
    }
    return
  }
  func.func @transform_0(%arg0: i32, %arg1: i32, %arg2: memref<4xi32, #tpu.memory_space<smem>>, %arg3: memref<2xi32, #tpu.memory_space<smem>>) -> (i32, i32) {
    %c2_i32 = arith.constant 2 : i32
    %0 = arith.muli %arg0, %c2_i32 : i32
    %1 = arith.addi %0, %arg1 : i32
    %2 = arith.index_cast %1 : i32 to index
    %3 = memref.load %arg2[%2] : memref<4xi32, #tpu.memory_space<smem>>
    %c0_i32 = arith.constant 0 : i32
    return %arg0, %3 : i32, i32
  }
  func.func @transform_1(%arg0: i32, %arg1: i32, %arg2: memref<4xi32, #tpu.memory_space<smem>>, %arg3: memref<2xi32, #tpu.memory_space<smem>>) -> (i32, i32) {
    %c0_i32 = arith.constant 0 : i32
    %c0_i32_0 = arith.constant 0 : i32
    %c0_i32_1 = arith.constant 0 : i32
    return %c0_i32, %c0_i32_0 : i32, i32
  }
  func.func @transform_2(%arg0: i32, %arg1: i32, %arg2: memref<4xi32, #tpu.memory_space<smem>>, %arg3: memref<2xi32, #tpu.memory_space<smem>>) -> (i32, i32) {
    %c0_i32 = arith.constant 0 : i32
    %c0_i32_0 = arith.constant 0 : i32
    return %arg0, %c0_i32 : i32, i32
  }
}

</mosaic_0001>

<bundles_post_ra>
// kernel: graph_conv_sparse.1
= control target key start
LH: loop header
LB: loop body
LE: loop exit
PB: predicated region body
PF: predicated region fallthrough
CT: control target
= control target key end

     0   :  { %s3966_s0 = inlined_call_operand.hbm [shape: s32[4], index: 0, kind: input, shape index: {}]   ;;  %s3967_s2 = inlined_call_operand.hbm [shape: bf16[1024,1024], index: 2, kind: input, shape index: {}]   ;;  %s3968_s3 = inlined_call_operand.vmem [shape: bf16[1024,128], index: 3, kind: input, shape index: {}]   ;;  %s3969_s4 = inlined_call_operand.hbm [shape: f32[1024,128], index: 4, kind: output, shape index: {}]   ;;  %s3970_s1 = inlined_call_operand.hbm [shape: s32[2], index: 1, kind: input, shape index: {}]  }
   0x1   :  { %s2904_s17 = scalar_lea.hbm %s3966_s0, 16 }
   0x2   :  { %p2905_p0 = scmp.ne.s32.totalorder %s3966_s0, %s2904_s17  ;;  %p2908_p1 = scmp.lt.u32.totalorder %s2904_s17, %s3966_s0 }
   0x4   :  { %p2910_p2 = pnand %p2908_p1, %p2905_p0 }
   0x6   :  { %2913 = shalt.err (!%p2910_p2)  }
   0x7   :  { %s3080_s22 = smov [#allocation3]   ;;  %s2914_s27 = scalar_lea.hbm %s3970_s1, 16 }
   0x8   :  { %10 = dma.hbm_to_smem %s3966_s0, 16, %s3080_s22, [#allocation2] }
   0x9   :  { %p2915_p3 = scmp.ne.s32.totalorder %s3970_s1, %s2914_s27  ;;  %p2918_p4 = scmp.lt.u32.totalorder %s2914_s27, %s3970_s1 }
   0xb   :  { %p2920_p5 = pnand %p2918_p4, %p2915_p3 }
   0xd   :  { %2923 = shalt.err (!%p2920_p5)  }
   0xe   :  { %s3081_s6 = smov [#allocation4]  }
   0xf   :  { %12 = dma.hbm_to_smem %s3970_s1, 16, %s3081_s6, [#allocation2] }
  0x10   :  { %3026 = dma.done.wait [#allocation2], 32 }
  0x11   :  { %3027 = vsyncadd [#allocation2], 4294967264 }
  0x12   :  { %14 = sfence }
  0x13   :  { %15 = vsyncpa [#allocation6], 0 }
  0x14   :  { %17 = vsyncpa [#allocation6 + $0x1], 0 }
  0x15   :  { %18 = vsyncpa [#allocation7], 0 }
  0x16   :  { %20 = vsyncpa [#allocation7 + $0x1], 0  ;;  %s3140_s0 = smov 0   ;;  %s3142_s9 = smov 0  }
  0x17   :  { %s3144_s10 = smov 0   ;;  %s3146_s11 = smov 0  }
  0x18   :  { %s3148_s12 = smov 0   ;;  %s3150_s13 = smov 0  }
  0x19   :  { %s3152_s1 = smov 0   ;;  %s3154_s14 = smov 0  }
  0x1a   :  { %s3156_s15 = smov 0   ;;  %s3158_s16 = smov 0  }
  0x1b   :  { %s3160_s17 = smov 0  }
  0x1c LB: > { %3977 = sst [smem:[#allocation14_spill]] %s3058_s13  ;;  %s35_s18 = sadd.s32 1, %s3070_s15  ;;  %s3078_s17 = sphi %s3160_s17, %s26_s17   ;;  %s3074_s16 = sphi %s3158_s16, %s4001_s16   ;;  %s3070_s15 = sphi %s3156_s15, %s3993_s15   ;;  %s3066_s14 = sphi %s3154_s14, %s4000_s14   ;;  %s3062_s1 = sphi %s3152_s1, %s3992_s1   ;;  %s3058_s13 = sphi %s3150_s13, %s3991_s13   ;;  %s3054_s12 = sphi %s3148_s12, %s3999_s12   ;;  %s3050_s11 = sphi %s3146_s11, %s3998_s11   ;;  %s3046_s10 = sphi %s3144_s10, %s3997_s10   ;;  %s3042_s9 = sphi %s3142_s9, %s3996_s9   ;;  %s3038_s0 = sphi %s3140_s0, %s3995_s0  }
  0x1d   : > { %3978 = sst [smem:[#allocation15_spill]] %s3070_s15  ;;  %s38_s19 = sadd.s32 1, %s3074_s16 }
  0x1e   : > { %p36_p6 = scmp.ge.s32.totalorder %s35_s18, 2  ;;  %s2379_s20 = sshll.u32 %s3074_s16, 1 }
  0x1f   : > { %s2377_s21 = sadd.s32 4294967295, %s3078_s17   ;;  %s3198_s22 = sadd.s32 %s3070_s15, %s2379_s20 }
  0x20   : > { %s4003_s18 = smov (%p36_p6, %s35_s18), 0  ;;  %s4005_s19 = smov (!%p36_p6, %s38_s19), %s3074_s16 }
  0x21   : > { %3979 = sst [smem:[#allocation16_spill]] %s4003_s18  ;;  %s2378_s23 = sadd.s32 4294967294, %s3078_s17  }
  0x22   : > { %s44_s24 = sld [smem:[#allocation3 + %s3198_s22]]  ;;  %p40_p7 = scmp.ge.s32.totalorder %s4005_s19, 2 }
  0x23   : > { %p60_p8 = scmp.ne.s32.totalorder %s3058_s13, %s3054_s12  ;;  %p66_p9 = scmp.ne.s32.totalorder %s3054_s12, %s3050_s11 }
  0x24   : > { %p67_p10 = scmp.eq.s32.totalorder %s2377_s21, 0  ;;  %s4007_s19 = smov (%p40_p7, %s4005_s19), 0 }
  0x25   : > { %3980 = sst [smem:[#allocation17_spill]] %s4007_s19  ;;  %p61_p11 = scmp.eq.s32.totalorder %s3078_s17, 0 }
  0x26   : > { %p3211_p12 = por %p67_p10, %p66_p9  ;;  %s2380_s26 = sshll.u32 %s4007_s19, 1 }
  0x27   : > { %s48_s27 = ssub.s32 %s3074_s16, %s4007_s19  ;;  %s46_s28 = sadd.s32 %s2380_s26, %s4003_s18 }
  0x28   : > { %s3981_s25 = scalar_select %p3211_p12, 1, 0 }
  0x29   : > { %p98_p13 = scmp.eq.s32.totalorder %s48_s27, 0  ;;  %s47_s29 = sld [smem:[#allocation3 + %s46_s28]] }
  0x2a   : > { %s100_s30 = sadd.s32 1, %s3046_s10  ;;  %p110_p0 = scmp.ne.s32.totalorder %s3046_s10, %s3042_s9 }
  0x2b   : > { %s3221_s5 = scalar_select %p98_p13, %s3046_s10, %s100_s30  }
  0x2c   : > { %p111_p1 = scmp.eq.s32.totalorder %s2377_s21, 3  ;;  %p116_p2 = scmp.ne.s32.totalorder %s3042_s9, %s3038_s0 }
  0x2d   : > { %p117_p3 = scmp.eq.s32.totalorder %s2378_s23, 3  ;;  %s53_s7 = sadd.s32 1, %s3058_s13 }
  0x2e   : > { %p3227_p4 = por %p111_p1, %p110_p0  ;;  %s140_s20 = sand.u32 1, %s3058_s13  }
  0x2f   : > { %p3232_p5 = por %p117_p3, %p116_p2  ;;  %s49_s11 = ssub.s32 %s44_s24, %s47_s29 }
  0x30   : > { %s3982_s6 = scalar_select %p3227_p4, 1, 0 }
  0x31   : > { %s3983_s8 = scalar_select %p3232_p5, 1, 0 }
  0x32   : > { %s50_s26 = sor.u32 %s49_s11, %s48_s27  ;;  %p62_p6 = por %p61_p11, %p60_p8 }
  0x33   : > { %p51_p7 = scmp.eq.s32.totalorder %s50_s26, 0  ;;  %s2383_s21 = sshll.u32 %s140_s20, 10 }
  0x34   : > { %p2581_p9 = scmp.lt.s32.totalorder %s3078_s17, 4  ;;  %s4009_s22 = smov (!%p62_p6, %s3198_s22), 0 }
  0x35   : > { %s3244_s23 = scalar_select %p51_p7, %s3058_s13, %s53_s7  }
  0x36   : > { %s2565_s28 = scalar_select %p62_p6, [#allocation3], [#allocation9] }
  0x37   : > { %3984 = sst [smem:[#allocation18_spill]] %s3244_s23  ;;  %s4013_s22 = smov (!%p2581_p9, %s4009_s22), 0 }
  0x38   : > { %s4011_s28 = smov (!%p2581_p9, %s2565_s28), [#allocation10]  ;;  %p3247_p10 = pnand %p2581_p9, %p62_p6 }
  0x39   : > { %s147_s24 = sld [smem:[%s4011_s28 + %s4013_s22]]  ;;  %s144_s27 = scalar_lea.vmem [#allocation5], %s2383_s21 }
  0x3a   : > { %s157_s29 = sshll.u32 %s144_s27, 4  ;;  %p2389_p13 = scmp.ge.s32.totalorder %s3078_s17, 1  ;;  %s3254_s29 = int_to_ptr.vmem [resolvable:$true] %s157_s29 }
  0x3b   : > { %p165_p8 = scmp.lt.s32.totalorder %s3078_s17, 5  ;;  %s2563_s11 = sshll.u32 %s3074_s16, 9 }
  0x3c   : > { %s3265_s22 = scalar_lea.sflag [#allocation6], %s140_s20  ;;  %p2926_p1 = pneg %p3247_p10 }
  0x3d   : > { %p3256_p11 = pnand %p2389_p13, %p165_p8  ;;  %s2929_s15 = scalar_lea.hbm %s3967_s2, 65536 }
  0x3f   : > { %s2386_s26 = sshll.u32 %s147_s24, 2 }
  0x40   : > { %s154_s19 = sadd.s32 %s2563_s11, %s2386_s26 }
  0x41   : > { %s2388_s18 = sshll.u32 %s154_s19, 6 }
  0x42   : > { %s3263_s13 = scalar_lea.hbm %s3967_s2, %s2388_s18 }
  0x43   : > { %s2924_s21 = scalar_lea.hbm %s3263_s13, 16384  ;;  %p2930_p6 = scmp.lt.u32.totalorder %s3263_s13, %s3967_s2 }
  0x44   : > { %p2925_p0 = scmp.ne.s32.totalorder %s3263_s13, %s2924_s21  ;;  %p2931_p7 = scmp.lt.u32.totalorder %s2929_s15, %s2924_s21 }
  0x45   : > { %p2933_p13 = scmp.lt.u32.totalorder %s2924_s21, %s3263_s13 }
  0x46   : > { %p2927_p2 = pnand %p2926_p1, %p2925_p0  ;;  %p2932_p9 = por %p2931_p7, %p2930_p6 }
  0x48   : > { %p2928_p3 = pneg %p2927_p2  ;;  %p2934_p8 = por %p2933_p13, %p2932_p9 }
  0x4a   : > { %p2935_p5 = pnand %p2934_p8, %p2928_p3 }
  0x4c   : > { %2938 = shalt.err (!%p2935_p5)
}
  0x4d   : > { %s2939_s20 = scalar_lea.vmem %s3254_s29, 16384  ;;  %s3082_s24 = smov [#allocation5]  }
  0x4e   : > { %p2940_p0 = scmp.ne.s32.totalorder %s3254_s29, %s2939_s20  ;;  %s2944_s27 = sshll.u32 %s3082_s24, 4  ;;  %s2945_s27 = int_to_ptr.vmem [resolvable:$false] %s2944_s27 }
  0x4f   : > { %s2946_s11 = scalar_lea.vmem %s2945_s27, 32768  ;;  %p2947_p12 = scmp.lt.s32.totalorder %s3254_s29, %s2945_s27 }
  0x50   : > { %p2942_p2 = pnand %p2940_p0, %p2926_p1  ;;  %p2948_p6 = scmp.lt.s32.totalorder %s2946_s11, %s2939_s20 }
  0x52   : > { %p2943_p4 = pneg %p2942_p2  ;;  %p2949_p7 = por %p2948_p6, %p2947_p12 }
  0x54   : > { %p2950_p9 = pnand %p2949_p7, %p2943_p4 }
  0x56   : > { %2953 = shalt.err (!%p2950_p9)
}
  0x57   : > { %s3083_s26 = smov 512   ;;  %s3084_s21 = smov 256  }
  0x58   : > { %s3085_s19 = smov 16   ;;  %169 = sbr.rel (%p3256_p11) target bundleno = 744 (0x2e8), region = 28 }
  0x59   : > { %2576 = dma.hbm_to_vmem [thread:$0]  (!%p3247_p10), %s3263_s13, 16384, %s3254_s29, %s3265_s22, %s3083_s26, %s3084_s21, %s3085_s19  }
  0x5a   : > { %s171_s28 = sand.u32 (!%p3256_p11), 1, %s3054_s12   ;;  %p3987_p12 = scmp.ne.s32.totalorder (!%p3256_p11), %s3981_s25, 0 }
  0x5b   : > { %s2390_s15 = sshll.u32 (!%p3256_p11), %s171_s28, 10  ;;  %s172_s18 = scalar_lea.sflag (!%p3256_p11), [#allocation6], %s171_s28 }
  0x5c   : > { %s3296_s23 = scalar_lea.vmem (!%p3256_p11), [#allocation5], %s2390_s15 }
  0x5f   : > { %3029 = dma.done.wait (%p3987_p12), %s172_s18, 16384  }
  0x60   : > { %3031 = vsyncadd (%p3987_p12), %s172_s18, 4294950912  ;;  %s193_s20 = sand.u32 1, %s3042_s9   ;;  %p2392_p4 = scmp.ne.s32.totalorder %s3062_s1, 0 }
  0x61   : > { %s2391_s13 = sshll.u32 %s193_s20, 9  ;;  %v3086_v0 = vmov (!%p2392_p4), 0.0  }
  0x62   : > { %s3305_s30 = scalar_lea.vmem [#allocation8], %s2391_s13  ;;  %206 = sbr.rel (%p2392_p4) target bundleno = 131 (0x83), region = 36 }
  0x63   : > { %207 = vst [vmem:[%s3305_s30] sm:$0xff] (!%p2392_p4), %v3086_v0  ;;  %208 = vst [vmem:[%s3305_s30 + $0x8] sm:$0xff] (!%p2392_p4), %v3086_v0 }
  0x64   : > { %209 = vst [vmem:[%s3305_s30 + $0x10] sm:$0xff] (!%p2392_p4), %v3086_v0  ;;  %210 = vst [vmem:[%s3305_s30 + $0x18] sm:$0xff] (!%p2392_p4), %v3086_v0 }
  0x65   : > { %211 = vst [vmem:[%s3305_s30 + $0x20] sm:$0xff] (!%p2392_p4), %v3086_v0  ;;  %212 = vst [vmem:[%s3305_s30 + $0x28] sm:$0xff] (!%p2392_p4), %v3086_v0 }
  0x66   : > { %213 = vst [vmem:[%s3305_s30 + $0x30] sm:$0xff] (!%p2392_p4), %v3086_v0  ;;  %214 = vst [vmem:[%s3305_s30 + $0x38] sm:$0xff] (!%p2392_p4), %v3086_v0 }
  0x67   : > { %215 = vst [vmem:[%s3305_s30 + $0x40] sm:$0xff] (!%p2392_p4), %v3086_v0  ;;  %216 = vst [vmem:[%s3305_s30 + $0x48] sm:$0xff] (!%p2392_p4), %v3086_v0 }
  0x68   : > { %217 = vst [vmem:[%s3305_s30 + $0x50] sm:$0xff] (!%p2392_p4), %v3086_v0  ;;  %218 = vst [vmem:[%s3305_s30 + $0x58] sm:$0xff] (!%p2392_p4), %v3086_v0 }
  0x69   : > { %219 = vst [vmem:[%s3305_s30 + $0x60] sm:$0xff] %v3086_v0  ;;  %220 = vst [vmem:[%s3305_s30 + $0x68] sm:$0xff] %v3086_v0 }
  0x6a   : > { %221 = vst [vmem:[%s3305_s30 + $0x70] sm:$0xff] %v3086_v0  ;;  %222 = vst [vmem:[%s3305_s30 + $0x78] sm:$0xff] %v3086_v0 }
  0x6b   : > { %223 = vst [vmem:[%s3305_s30 + $0x80] sm:$0xff] %v3086_v0  ;;  %224 = vst [vmem:[%s3305_s30 + $0x88] sm:$0xff] %v3086_v0 }
  0x6c   : > { %225 = vst [vmem:[%s3305_s30 + $0x90] sm:$0xff] %v3086_v0  ;;  %226 = vst [vmem:[%s3305_s30 + $0x98] sm:$0xff] %v3086_v0 }
  0x6d   : > { %227 = vst [vmem:[%s3305_s30 + $0xa0] sm:$0xff] %v3086_v0  ;;  %228 = vst [vmem:[%s3305_s30 + $0xa8] sm:$0xff] %v3086_v0 }
  0x6e   : > { %229 = vst [vmem:[%s3305_s30 + $0xb0] sm:$0xff] %v3086_v0  ;;  %230 = vst [vmem:[%s3305_s30 + $0xb8] sm:$0xff] %v3086_v0 }
  0x6f   : > { %231 = vst [vmem:[%s3305_s30 + $0xc0] sm:$0xff] %v3086_v0  ;;  %232 = vst [vmem:[%s3305_s30 + $0xc8] sm:$0xff] %v3086_v0 }
  0x70   : > { %233 = vst [vmem:[%s3305_s30 + $0xd0] sm:$0xff] %v3086_v0  ;;  %234 = vst [vmem:[%s3305_s30 + $0xd8] sm:$0xff] %v3086_v0 }
  0x71   : > { %235 = vst [vmem:[%s3305_s30 + $0xe0] sm:$0xff] %v3086_v0  ;;  %236 = vst [vmem:[%s3305_s30 + $0xe8] sm:$0xff] %v3086_v0 }
  0x72   : > { %237 = vst [vmem:[%s3305_s30 + $0xf0] sm:$0xff] %v3086_v0  ;;  %238 = vst [vmem:[%s3305_s30 + $0xf8] sm:$0xff] %v3086_v0 }
  0x73   : > { %239 = vst [vmem:[%s3305_s30 + $0x100] sm:$0xff] %v3086_v0  ;;  %240 = vst [vmem:[%s3305_s30 + $0x108] sm:$0xff] %v3086_v0 }
  0x74   : > { %241 = vst [vmem:[%s3305_s30 + $0x110] sm:$0xff] %v3086_v0  ;;  %242 = vst [vmem:[%s3305_s30 + $0x118] sm:$0xff] %v3086_v0 }
  0x75   : > { %243 = vst [vmem:[%s3305_s30 + $0x120] sm:$0xff] %v3086_v0  ;;  %244 = vst [vmem:[%s3305_s30 + $0x128] sm:$0xff] %v3086_v0 }
  0x76   : > { %245 = vst [vmem:[%s3305_s30 + $0x130] sm:$0xff] %v3086_v0  ;;  %246 = vst [vmem:[%s3305_s30 + $0x138] sm:$0xff] %v3086_v0 }
  0x77   : > { %247 = vst [vmem:[%s3305_s30 + $0x140] sm:$0xff] %v3086_v0  ;;  %248 = vst [vmem:[%s3305_s30 + $0x148] sm:$0xff] %v3086_v0 }
  0x78   : > { %249 = vst [vmem:[%s3305_s30 + $0x150] sm:$0xff] %v3086_v0  ;;  %250 = vst [vmem:[%s3305_s30 + $0x158] sm:$0xff] %v3086_v0 }
  0x79   : > { %251 = vst [vmem:[%s3305_s30 + $0x160] sm:$0xff] %v3086_v0  ;;  %252 = vst [vmem:[%s3305_s30 + $0x168] sm:$0xff] %v3086_v0 }
  0x7a   : > { %253 = vst [vmem:[%s3305_s30 + $0x170] sm:$0xff] %v3086_v0  ;;  %254 = vst [vmem:[%s3305_s30 + $0x178] sm:$0xff] %v3086_v0 }
  0x7b   : > { %255 = vst [vmem:[%s3305_s30 + $0x180] sm:$0xff] %v3086_v0  ;;  %256 = vst [vmem:[%s3305_s30 + $0x188] sm:$0xff] %v3086_v0 }
  0x7c   : > { %257 = vst [vmem:[%s3305_s30 + $0x190] sm:$0xff] %v3086_v0  ;;  %258 = vst [vmem:[%s3305_s30 + $0x198] sm:$0xff] %v3086_v0 }
  0x7d   : > { %259 = vst [vmem:[%s3305_s30 + $0x1a0] sm:$0xff] %v3086_v0  ;;  %260 = vst [vmem:[%s3305_s30 + $0x1a8] sm:$0xff] %v3086_v0 }
  0x7e   : > { %261 = vst [vmem:[%s3305_s30 + $0x1b0] sm:$0xff] %v3086_v0  ;;  %262 = vst [vmem:[%s3305_s30 + $0x1b8] sm:$0xff] %v3086_v0 }
  0x7f   : > { %263 = vst [vmem:[%s3305_s30 + $0x1c0] sm:$0xff] %v3086_v0  ;;  %264 = vst [vmem:[%s3305_s30 + $0x1c8] sm:$0xff] %v3086_v0 }
  0x80   : > { %265 = vst [vmem:[%s3305_s30 + $0x1d0] sm:$0xff] %v3086_v0  ;;  %266 = vst [vmem:[%s3305_s30 + $0x1d8] sm:$0xff] %v3086_v0 }
  0x81   : > { %267 = vst [vmem:[%s3305_s30 + $0x1e0] sm:$0xff] %v3086_v0  ;;  %268 = vst [vmem:[%s3305_s30 + $0x1e8] sm:$0xff] %v3086_v0 }
  0x82   : > { %269 = vst [vmem:[%s3305_s30 + $0x1f0] sm:$0xff] %v3086_v0  ;;  %270 = vst [vmem:[%s3305_s30 + $0x1f8] sm:$0xff] %v3086_v0 }
  0x83 PF: > { %s271_s25 = sld [smem:[#allocation4 + %s3066_s14]] }
  0x89   : > { %p2393_p5 = scmp.ge.s32.totalorder %s3062_s1, %s271_s25 }
  0x8a   : > { %s2394_s29 = sshll.u32 (!%p2393_p5), %s3066_s14, 1  ;;  %v3087_v1 = vmov (!%p2393_p5), 0   ;;  %v2714_v2 = vld [vmem:[%s3296_s23 + $0x4] ss:$16 sps:$4 sm:$0xff] (!%p2393_p5)   ;;  %v2717_v3 = vld [vmem:[%s3296_s23 + $0xc] ss:$16 sps:$4 sm:$0xff] (!%p2393_p5)  }
  0x8b   : > { %275 = sbr.rel (%p2393_p5) target bundleno = 682 (0x2aa), region = 40  ;;  %1372 = vmatprep.subr.bf16.mxu0 (!%p2393_p5), %v3087_v1  ;;  %1661 = vmatprep.subr.bf16.mxu1 (!%p2393_p5), %v3087_v1  ;;  %s277_s7 = sadd.s32 (!%p2393_p5), %s3062_s1, %s2394_s29  ;;  %v2712_v36 = vld [vmem:[%s3296_s23] ss:$16 sps:$4 sm:$0xff] (!%p2393_p5)   ;;  %v2715_v37 = vld [vmem:[%s3296_s23 + $0x8] ss:$16 sps:$4 sm:$0xff] (!%p2393_p5)  }
  0x8c   : > { %s278_s22 = sld [smem:[#allocation3 + %s277_s7]] (!%p2393_p5)  ;;  %1404 = vmatprep.mubr.bf16.mxu0 (!%p2393_p5), %v2714_v2  ;;  %1693 = vmatprep.mubr.bf16.mxu1 (!%p2393_p5), %v2717_v3  ;;  %v2718_v38 = vld [vmem:[%s3296_s23 + $0x24] ss:$16 sps:$4 sm:$0xff] (!%p2393_p5)   ;;  %v2720_v39 = vld [vmem:[%s3296_s23 + $0x2c] ss:$16 sps:$4 sm:$0xff] (!%p2393_p5)  }
  0x8d   : > { %v2722_v40 = vld [vmem:[%s3296_s23 + $0x20] ss:$16 sps:$4 sm:$0xff] (!%p2393_p5)   ;;  %v2723_v41 = vld [vmem:[%s3296_s23 + $0x28] ss:$16 sps:$4 sm:$0xff] (!%p2393_p5)   ;;  %v2724_v42 = vld [vmem:[%s3296_s23 + $0x44] ss:$16 sps:$4 sm:$0xff] (!%p2393_p5)  }
  0x8e   : > { %v2726_v43 = vld [vmem:[%s3296_s23 + $0x4c] ss:$16 sps:$4 sm:$0xff] (!%p2393_p5)   ;;  %v2728_v44 = vld [vmem:[%s3296_s23 + $0x40] ss:$16 sps:$4 sm:$0xff] (!%p2393_p5)   ;;  %v2729_v45 = vld [vmem:[%s3296_s23 + $0x48] ss:$16 sps:$4 sm:$0xff] (!%p2393_p5)  }
  0x8f   : > { %v2730_v46 = vld [vmem:[%s3296_s23 + $0x64] ss:$16 sps:$4 sm:$0xff] (!%p2393_p5)   ;;  %v2732_v47 = vld [vmem:[%s3296_s23 + $0x6c] ss:$16 sps:$4 sm:$0xff] (!%p2393_p5)   ;;  %v2734_v48 = vld [vmem:[%s3296_s23 + $0x60] ss:$16 sps:$4 sm:$0xff] (!%p2393_p5)  }
  0x90   : > { %v2735_v49 = vld [vmem:[%s3296_s23 + $0x68] ss:$16 sps:$4 sm:$0xff] (!%p2393_p5)   ;;  %v2736_v50 = vld [vmem:[%s3296_s23 + $0x84] ss:$16 sps:$4 sm:$0xff] (!%p2393_p5)   ;;  %v2738_v51 = vld [vmem:[%s3296_s23 + $0x8c] ss:$16 sps:$4 sm:$0xff] (!%p2393_p5)  }
  0x91   : > { %v2740_v52 = vld [vmem:[%s3296_s23 + $0x80] ss:$16 sps:$4 sm:$0xff] (!%p2393_p5)   ;;  %v2741_v53 = vld [vmem:[%s3296_s23 + $0x88] ss:$16 sps:$4 sm:$0xff] (!%p2393_p5)   ;;  %v2742_v54 = vld [vmem:[%s3296_s23 + $0xa4] ss:$16 sps:$4 sm:$0xff] (!%p2393_p5)  }
  0x92   : > { %s2395_s24 = sshll.u32 %s278_s22, 9  ;;  %v2744_v55 = vld [vmem:[%s3296_s23 + $0xac] ss:$16 sps:$4 sm:$0xff]   ;;  %v2746_v56 = vld [vmem:[%s3296_s23 + $0xa0] ss:$16 sps:$4 sm:$0xff]  }
  0x93   : > { %s280_s27 = sshra.s32 %s2395_s24, 3  ;;  %v2747_v57 = vld [vmem:[%s3296_s23 + $0xa8] ss:$16 sps:$4 sm:$0xff]   ;;  %v2748_v58 = vld [vmem:[%s3296_s23 + $0xc4] ss:$16 sps:$4 sm:$0xff]  }
  0x94   : > { %s2396_s11 = sshll.u32 %s280_s27, 2  ;;  %v2750_v59 = vld [vmem:[%s3296_s23 + $0xcc] ss:$16 sps:$4 sm:$0xff]   ;;  %v2752_v60 = vld [vmem:[%s3296_s23 + $0xc0] ss:$16 sps:$4 sm:$0xff]  }
  0x95   : > { %s3447_s19 = scalar_lea.vmem %s3968_s3, %s2396_s11  ;;  %v2753_v61 = vld [vmem:[%s3296_s23 + $0xc8] ss:$16 sps:$4 sm:$0xff]   ;;  %v2754_v62 = vld [vmem:[%s3296_s23 + $0xe4] ss:$16 sps:$4 sm:$0xff]   ;;  %v2756_v63 = vld [vmem:[%s3296_s23 + $0xec] ss:$16 sps:$4 sm:$0xff]  }
  0x96   : > { %v2680_v4 = vld [vmem:[%s3447_s19] sm:$0xff]   ;;  %v2682_v6 = vld [vmem:[%s3447_s19 + $0x8] sm:$0xff]   ;;  %v2684_v8 = vld [vmem:[%s3447_s19 + $0x10] sm:$0xff]  }
  0x97   : > { %v2681_v5 = vld [vmem:[%s3447_s19 + $0x80] sm:$0xff]   ;;  %1373 = vmatpush1.bf16.msra.mxu0 %v2680_v4  ;;  %v2683_v7 = vld [vmem:[%s3447_s19 + $0x88] sm:$0xff]   ;;  %v2685_v9 = vld [vmem:[%s3447_s19 + $0x90] sm:$0xff]  }
  0x98   : > { %1662 = vmatpush1.bf16.msra.mxu1 %v2681_v5  ;;  %1374 = vmatprep.subr.bf16.mxu0 %v3087_v1  ;;  %v2686_v10 = vld [vmem:[%s3447_s19 + $0x18] sm:$0xff]   ;;  %v2688_v12 = vld [vmem:[%s3447_s19 + $0x20] sm:$0xff]   ;;  %v2690_v14 = vld [vmem:[%s3447_s19 + $0x28] sm:$0xff]  }
  0x99   : > { %1663 = vmatprep.subr.bf16.mxu1 %v3087_v1  ;;  %v2687_v11 = vld [vmem:[%s3447_s19 + $0x98] sm:$0xff]   ;;  %v2689_v13 = vld [vmem:[%s3447_s19 + $0xa0] sm:$0xff]   ;;  %v2691_v15 = vld [vmem:[%s3447_s19 + $0xa8] sm:$0xff]  }
  0x9a   : > { %v2692_v16 = vld [vmem:[%s3447_s19 + $0x30] sm:$0xff]   ;;  %v2694_v18 = vld [vmem:[%s3447_s19 + $0x38] sm:$0xff]   ;;  %v2696_v20 = vld [vmem:[%s3447_s19 + $0x40] sm:$0xff]  }
  0x9b   : > { %1375 = vmatpush1.bf16.msra.mxu0 %v2682_v6  ;;  %v2693_v17 = vld [vmem:[%s3447_s19 + $0xb0] sm:$0xff]   ;;  %v2695_v19 = vld [vmem:[%s3447_s19 + $0xb8] sm:$0xff]   ;;  %v2697_v21 = vld [vmem:[%s3447_s19 + $0xc0] sm:$0xff]  }
  0x9c   : > { %1664 = vmatpush1.bf16.msra.mxu1 %v2683_v7  ;;  %1376 = vmatprep.subr.bf16.mxu0 %v3087_v1  ;;  %v2698_v22 = vld [vmem:[%s3447_s19 + $0x48] sm:$0xff]   ;;  %v2700_v24 = vld [vmem:[%s3447_s19 + $0x50] sm:$0xff]   ;;  %v2702_v26 = vld [vmem:[%s3447_s19 + $0x58] sm:$0xff]  }
  0x9d   : > { %1665 = vmatprep.subr.bf16.mxu1 %v3087_v1  ;;  %v2699_v23 = vld [vmem:[%s3447_s19 + $0xc8] sm:$0xff]   ;;  %v2701_v25 = vld [vmem:[%s3447_s19 + $0xd0] sm:$0xff]   ;;  %v2703_v27 = vld [vmem:[%s3447_s19 + $0xd8] sm:$0xff]  }
  0x9e   : > { %v2704_v28 = vld [vmem:[%s3447_s19 + $0x60] sm:$0xff]   ;;  %v2706_v30 = vld [vmem:[%s3447_s19 + $0x68] sm:$0xff]   ;;  %v2708_v32 = vld [vmem:[%s3447_s19 + $0x70] sm:$0xff]  }
  0x9f   : > { %1377 = vmatpush1.bf16.msra.mxu0 %v2684_v8  ;;  %v2705_v29 = vld [vmem:[%s3447_s19 + $0xe0] sm:$0xff]   ;;  %v2707_v31 = vld [vmem:[%s3447_s19 + $0xe8] sm:$0xff]   ;;  %v2709_v33 = vld [vmem:[%s3447_s19 + $0xf0] sm:$0xff]  }
  0xa0   : > { %1666 = vmatpush1.bf16.msra.mxu1 %v2685_v9  ;;  %1378 = vmatprep.subr.bf16.mxu0 %v3087_v1  ;;  %v2710_v34 = vld [vmem:[%s3447_s19 + $0x78] sm:$0xff]   ;;  %v2758_v0 = vld [vmem:[%s3296_s23 + $0xe0] ss:$16 sps:$4 sm:$0xff]   ;;  %v2760_v2 = vld [vmem:[%s3296_s23 + $0x104] ss:$16 sps:$4 sm:$0xff]  }
  0xa1   : > { %1667 = vmatprep.subr.bf16.mxu1 %v3087_v1  ;;  %v2711_v35 = vld [vmem:[%s3447_s19 + $0xf8] sm:$0xff]   ;;  %v2764_v4 = vld [vmem:[%s3296_s23 + $0x100] ss:$16 sps:$4 sm:$0xff]   ;;  %v2766_v6 = vld [vmem:[%s3296_s23 + $0x124] ss:$16 sps:$4 sm:$0xff]  }
  0xa2   : > { %v2762_v3 = vld [vmem:[%s3296_s23 + $0x10c] ss:$16 sps:$4 sm:$0xff]   ;;  %v2765_v5 = vld [vmem:[%s3296_s23 + $0x108] ss:$16 sps:$4 sm:$0xff]   ;;  %v2770_v8 = vld [vmem:[%s3296_s23 + $0x120] ss:$16 sps:$4 sm:$0xff]  }
  0xa3   : > { %1379 = vmatpush1.bf16.msra.mxu0 %v2686_v10  ;;  %v2768_v7 = vld [vmem:[%s3296_s23 + $0x12c] ss:$16 sps:$4 sm:$0xff]   ;;  %v2771_v9 = vld [vmem:[%s3296_s23 + $0x128] ss:$16 sps:$4 sm:$0xff]   ;;  %v2772_v10 = vld [vmem:[%s3296_s23 + $0x144] ss:$16 sps:$4 sm:$0xff]  }
  0xa4   : > { %1668 = vmatpush1.bf16.msra.mxu1 %v2687_v11  ;;  %1380 = vmatprep.subr.bf16.mxu0 %v3087_v1  ;;  %v2774_v11 = vld [vmem:[%s3296_s23 + $0x14c] ss:$16 sps:$4 sm:$0xff]  }
  0xa5   : > { %1669 = vmatprep.subr.bf16.mxu1 %v3087_v1 }
  0xa7   : > { %1381 = vmatpush1.bf16.msra.mxu0 %v2688_v12  ;;  %v2776_v12 = vld [vmem:[%s3296_s23 + $0x140] ss:$16 sps:$4 sm:$0xff]  }
  0xa8   : > { %1670 = vmatpush1.bf16.msra.mxu1 %v2689_v13  ;;  %1382 = vmatprep.subr.bf16.mxu0 %v3087_v1  ;;  %v2777_v13 = vld [vmem:[%s3296_s23 + $0x148] ss:$16 sps:$4 sm:$0xff]  }
  0xa9   : > { %1671 = vmatprep.subr.bf16.mxu1 %v3087_v1 }
  0xab   : > { %1383 = vmatpush1.bf16.msra.mxu0 %v2690_v14  ;;  %v2778_v14 = vld [vmem:[%s3296_s23 + $0x164] ss:$16 sps:$4 sm:$0xff]  }
  0xac   : > { %1672 = vmatpush1.bf16.msra.mxu1 %v2691_v15  ;;  %1384 = vmatprep.subr.bf16.mxu0 %v3087_v1  ;;  %v2780_v15 = vld [vmem:[%s3296_s23 + $0x16c] ss:$16 sps:$4 sm:$0xff]  }
  0xad   : > { %1673 = vmatprep.subr.bf16.mxu1 %v3087_v1 }
  0xaf   : > { %1385 = vmatpush1.bf16.msra.mxu0 %v2692_v16  ;;  %v2782_v16 = vld [vmem:[%s3296_s23 + $0x160] ss:$16 sps:$4 sm:$0xff]  }
  0xb0   : > { %1674 = vmatpush1.bf16.msra.mxu1 %v2693_v17  ;;  %1386 = vmatprep.subr.bf16.mxu0 %v3087_v1  ;;  %v2783_v17 = vld [vmem:[%s3296_s23 + $0x168] ss:$16 sps:$4 sm:$0xff]  }
  0xb1   : > { %1675 = vmatprep.subr.bf16.mxu1 %v3087_v1 }
  0xb3   : > { %1387 = vmatpush1.bf16.msra.mxu0 %v2694_v18  ;;  %v2784_v18 = vld [vmem:[%s3296_s23 + $0x184] ss:$16 sps:$4 sm:$0xff]  }
  0xb4   : > { %1676 = vmatpush1.bf16.msra.mxu1 %v2695_v19  ;;  %1388 = vmatprep.subr.bf16.mxu0 %v3087_v1  ;;  %v2786_v19 = vld [vmem:[%s3296_s23 + $0x18c] ss:$16 sps:$4 sm:$0xff]  }
  0xb5   : > { %1677 = vmatprep.subr.bf16.mxu1 %v3087_v1 }
  0xb7   : > { %1389 = vmatpush1.bf16.msra.mxu0 %v2696_v20  ;;  %v2788_v20 = vld [vmem:[%s3296_s23 + $0x180] ss:$16 sps:$4 sm:$0xff]  }
  0xb8   : > { %1678 = vmatpush1.bf16.msra.mxu1 %v2697_v21  ;;  %1390 = vmatprep.subr.bf16.mxu0 %v3087_v1  ;;  %v2789_v21 = vld [vmem:[%s3296_s23 + $0x188] ss:$16 sps:$4 sm:$0xff]  }
  0xb9   : > { %1679 = vmatprep.subr.bf16.mxu1 %v3087_v1 }
  0xbb   : > { %1391 = vmatpush1.bf16.msra.mxu0 %v2698_v22  ;;  %v2790_v22 = vld [vmem:[%s3296_s23 + $0x1a4] ss:$16 sps:$4 sm:$0xff]  }
  0xbc   : > { %1680 = vmatpush1.bf16.msra.mxu1 %v2699_v23  ;;  %1392 = vmatprep.subr.bf16.mxu0 %v3087_v1  ;;  %v2792_v23 = vld [vmem:[%s3296_s23 + $0x1ac] ss:$16 sps:$4 sm:$0xff]  }
  0xbd   : > { %1681 = vmatprep.subr.bf16.mxu1 %v3087_v1 }
  0xbf   : > { %1393 = vmatpush1.bf16.msra.mxu0 %v2700_v24  ;;  %v2794_v24 = vld [vmem:[%s3296_s23 + $0x1a0] ss:$16 sps:$4 sm:$0xff]  }
  0xc0   : > { %1682 = vmatpush1.bf16.msra.mxu1 %v2701_v25  ;;  %1394 = vmatprep.subr.bf16.mxu0 %v3087_v1  ;;  %v2795_v25 = vld [vmem:[%s3296_s23 + $0x1a8] ss:$16 sps:$4 sm:$0xff]  }
  0xc1   : > { %1683 = vmatprep.subr.bf16.mxu1 %v3087_v1 }
  0xc3   : > { %1395 = vmatpush1.bf16.msra.mxu0 %v2702_v26  ;;  %v2796_v26 = vld [vmem:[%s3296_s23 + $0x1c4] ss:$16 sps:$4 sm:$0xff]  }
  0xc4   : > { %1684 = vmatpush1.bf16.msra.mxu1 %v2703_v27  ;;  %1396 = vmatprep.subr.bf16.mxu0 %v3087_v1  ;;  %v2798_v27 = vld [vmem:[%s3296_s23 + $0x1cc] ss:$16 sps:$4 sm:$0xff]  }
  0xc5   : > { %1685 = vmatprep.subr.bf16.mxu1 %v3087_v1 }
  0xc7   : > { %1397 = vmatpush1.bf16.msra.mxu0 %v2704_v28  ;;  %v2800_v28 = vld [vmem:[%s3296_s23 + $0x1c0] ss:$16 sps:$4 sm:$0xff]  }
  0xc8   : > { %1686 = vmatpush1.bf16.msra.mxu1 %v2705_v29  ;;  %1398 = vmatprep.subr.bf16.mxu0 %v3087_v1  ;;  %v2801_v29 = vld [vmem:[%s3296_s23 + $0x1c8] ss:$16 sps:$4 sm:$0xff]  }
  0xc9   : > { %1687 = vmatprep.subr.bf16.mxu1 %v3087_v1 }
  0xcb   : > { %1399 = vmatpush1.bf16.msra.mxu0 %v2706_v30  ;;  %v2802_v30 = vld [vmem:[%s3296_s23 + $0x1e4] ss:$16 sps:$4 sm:$0xff]  }
  0xcc   : > { %1688 = vmatpush1.bf16.msra.mxu1 %v2707_v31  ;;  %1400 = vmatprep.subr.bf16.mxu0 %v3087_v1  ;;  %v2804_v31 = vld [vmem:[%s3296_s23 + $0x1ec] ss:$16 sps:$4 sm:$0xff]  }
  0xcd   : > { %1689 = vmatprep.subr.bf16.mxu1 %v3087_v1 }
  0xcf   : > { %1401 = vmatpush1.bf16.msra.mxu0 %v2708_v32  ;;  %v2806_v32 = vld [vmem:[%s3296_s23 + $0x1e0] ss:$16 sps:$4 sm:$0xff]  }
  0xd0   : > { %1690 = vmatpush1.bf16.msra.mxu1 %v2709_v33  ;;  %1402 = vmatprep.subr.bf16.mxu0 %v3087_v1  ;;  %v2807_v33 = vld [vmem:[%s3296_s23 + $0x1e8] ss:$16 sps:$4 sm:$0xff]  }
  0xd1   : > { %1691 = vmatprep.subr.bf16.mxu1 %v3087_v1  ;;  %v2759_v1 = vld [vmem:[%s3296_s23 + $0xe8] ss:$16 sps:$4 sm:$0xff]  }
  0xd3   : > { %1403 = vmatpush1.bf16.msra.mxu0 %v2710_v34  ;;  %v2808_v34 = vld [vmem:[%s3296_s23 + $0x204] ss:$16 sps:$4 sm:$0xff]  }
  0xd4   : > { %1692 = vmatpush1.bf16.msra.mxu1 %v2711_v35  ;;  %v2810_v35 = vld [vmem:[%s3296_s23 + $0x20c] ss:$16 sps:$4 sm:$0xff]  }
  0xd6   : > { %1405 = vmatmul.mubr.bf16.vlgmr.msra.gmra.mrb[0].mxu0 %v2712_v36  ;;  %v2812_v36 = vld [vmem:[%s3296_s23 + $0x200] ss:$16 sps:$4 sm:$0xff]  }
  0xd7   : > { %1694 = vmatmul.mubr.bf16.vlgmr.msra.gmra.mrb[0].mxu1 %v2715_v37  ;;  %1412 = vmatprep.mubr.bf16.mxu0 %v2718_v38  ;;  %v2813_v37 = vld [vmem:[%s3296_s23 + $0x208] ss:$16 sps:$4 sm:$0xff]   ;;  %v2814_v38 = vld [vmem:[%s3296_s23 + $0x224] ss:$16 sps:$4 sm:$0xff]  }
  0xd8   : > { %1701 = vmatprep.mubr.bf16.mxu1 %v2720_v39  ;;  %v2816_v39 = vld [vmem:[%s3296_s23 + $0x22c] ss:$16 sps:$4 sm:$0xff]  }
  0xde   : > { %1413 = vmatmul.mubr.bf16.gmra.mrb[4].mxu0 %v2722_v40  ;;  %v2818_v40 = vld [vmem:[%s3296_s23 + $0x220] ss:$16 sps:$4 sm:$0xff]  }
  0xdf   : > { %1702 = vmatmul.mubr.bf16.gmra.mrb[4].mxu1 %v2723_v41  ;;  %1420 = vmatprep.mubr.bf16.mxu0 %v2724_v42  ;;  %v2819_v41 = vld [vmem:[%s3296_s23 + $0x228] ss:$16 sps:$4 sm:$0xff]   ;;  %v2820_v42 = vld [vmem:[%s3296_s23 + $0x244] ss:$16 sps:$4 sm:$0xff]  }
  0xe0   : > { %1709 = vmatprep.mubr.bf16.mxu1 %v2726_v43  ;;  %v2822_v43 = vld [vmem:[%s3296_s23 + $0x24c] ss:$16 sps:$4 sm:$0xff]  }
  0xe6   : > { %1421 = vmatmul.mubr.bf16.gmra.mrb[8].mxu0 %v2728_v44  ;;  %v2824_v44 = vld [vmem:[%s3296_s23 + $0x240] ss:$16 sps:$4 sm:$0xff]  }
  0xe7   : > { %1710 = vmatmul.mubr.bf16.gmra.mrb[8].mxu1 %v2729_v45  ;;  %1428 = vmatprep.mubr.bf16.mxu0 %v2730_v46  ;;  %v2825_v45 = vld [vmem:[%s3296_s23 + $0x248] ss:$16 sps:$4 sm:$0xff]   ;;  %v2826_v46 = vld [vmem:[%s3296_s23 + $0x264] ss:$16 sps:$4 sm:$0xff]  }
  0xe8   : > { %1717 = vmatprep.mubr.bf16.mxu1 %v2732_v47  ;;  %v2828_v47 = vld [vmem:[%s3296_s23 + $0x26c] ss:$16 sps:$4 sm:$0xff]  }
  0xee   : > { %1429 = vmatmul.mubr.bf16.gmra.mrb[12].mxu0 %v2734_v48  ;;  %v2830_v48 = vld [vmem:[%s3296_s23 + $0x260] ss:$16 sps:$4 sm:$0xff]  }
  0xef   : > { %1718 = vmatmul.mubr.bf16.gmra.mrb[12].mxu1 %v2735_v49  ;;  %1436 = vmatprep.mubr.bf16.mxu0 %v2736_v50  ;;  %v2831_v49 = vld [vmem:[%s3296_s23 + $0x268] ss:$16 sps:$4 sm:$0xff]   ;;  %v2832_v50 = vld [vmem:[%s3296_s23 + $0x284] ss:$16 sps:$4 sm:$0xff]  }
  0xf0   : > { %1725 = vmatprep.mubr.bf16.mxu1 %v2738_v51  ;;  %v2834_v51 = vld [vmem:[%s3296_s23 + $0x28c] ss:$16 sps:$4 sm:$0xff]  }
  0xf6   : > { %1437 = vmatmul.mubr.bf16.gmra.mrb[16].mxu0 %v2740_v52  ;;  %v2836_v52 = vld [vmem:[%s3296_s23 + $0x280] ss:$16 sps:$4 sm:$0xff]  }
  0xf7   : > { %1726 = vmatmul.mubr.bf16.gmra.mrb[16].mxu1 %v2741_v53  ;;  %1444 = vmatprep.mubr.bf16.mxu0 %v2742_v54  ;;  %v2837_v53 = vld [vmem:[%s3296_s23 + $0x288] ss:$16 sps:$4 sm:$0xff]   ;;  %v2838_v54 = vld [vmem:[%s3296_s23 + $0x2a4] ss:$16 sps:$4 sm:$0xff]  }
  0xf8   : > { %1733 = vmatprep.mubr.bf16.mxu1 %v2744_v55  ;;  %v2840_v55 = vld [vmem:[%s3296_s23 + $0x2ac] ss:$16 sps:$4 sm:$0xff]  }
  0xfe   : > { %1445 = vmatmul.mubr.bf16.gmra.mrb[20].mxu0 %v2746_v56  ;;  %v2842_v56 = vld [vmem:[%s3296_s23 + $0x2a0] ss:$16 sps:$4 sm:$0xff]  }
  0xff   : > { %1734 = vmatmul.mubr.bf16.gmra.mrb[20].mxu1 %v2747_v57  ;;  %1452 = vmatprep.mubr.bf16.mxu0 %v2748_v58  ;;  %v2843_v57 = vld [vmem:[%s3296_s23 + $0x2a8] ss:$16 sps:$4 sm:$0xff]   ;;  %v2844_v58 = vld [vmem:[%s3296_s23 + $0x2c4] ss:$16 sps:$4 sm:$0xff]  }
 0x100   : > { %1741 = vmatprep.mubr.bf16.mxu1 %v2750_v59  ;;  %v2846_v59 = vld [vmem:[%s3296_s23 + $0x2cc] ss:$16 sps:$4 sm:$0xff]  }
 0x106   : > { %1453 = vmatmul.mubr.bf16.gmra.mrb[24].mxu0 %v2752_v60  ;;  %v2848_v60 = vld [vmem:[%s3296_s23 + $0x2c0] ss:$16 sps:$4 sm:$0xff]  }
 0x107   : > { %1742 = vmatmul.mubr.bf16.gmra.mrb[24].mxu1 %v2753_v61  ;;  %1460 = vmatprep.mubr.bf16.mxu0 %v2754_v62  ;;  %v2849_v61 = vld [vmem:[%s3296_s23 + $0x2c8] ss:$16 sps:$4 sm:$0xff]   ;;  %v2850_v62 = vld [vmem:[%s3296_s23 + $0x2e4] ss:$16 sps:$4 sm:$0xff]  }
 0x108   : > { %1749 = vmatprep.mubr.bf16.mxu1 %v2756_v63  ;;  %v2852_v63 = vld [vmem:[%s3296_s23 + $0x2ec] ss:$16 sps:$4 sm:$0xff]  }
 0x10e   : > { %1461 = vmatmul.mubr.bf16.gmra.mrb[28].mxu0 %v2758_v0  ;;  %v2854_v0 = vld [vmem:[%s3296_s23 + $0x2e0] ss:$16 sps:$4 sm:$0xff]  }
 0x10f   : > { %1750 = vmatmul.mubr.bf16.gmra.mrb[28].mxu1 %v2759_v1  ;;  %1468 = vmatprep.mubr.bf16.mxu0 %v2760_v2  ;;  %v2855_v1 = vld [vmem:[%s3296_s23 + $0x2e8] ss:$16 sps:$4 sm:$0xff]   ;;  %v2856_v2 = vld [vmem:[%s3296_s23 + $0x304] ss:$16 sps:$4 sm:$0xff]  }
 0x110   : > { %1757 = vmatprep.mubr.bf16.mxu1 %v2762_v3  ;;  %v2858_v3 = vld [vmem:[%s3296_s23 + $0x30c] ss:$16 sps:$4 sm:$0xff]  }
 0x116   : > { %1469 = vmatmul.mubr.bf16.gmra.mrb[32].mxu0 %v2764_v4  ;;  %v2860_v4 = vld [vmem:[%s3296_s23 + $0x300] ss:$16 sps:$4 sm:$0xff]  }
 0x117   : > { %1758 = vmatmul.mubr.bf16.gmra.mrb[32].mxu1 %v2765_v5  ;;  %1476 = vmatprep.mubr.bf16.mxu0 %v2766_v6  ;;  %v2861_v5 = vld [vmem:[%s3296_s23 + $0x308] ss:$16 sps:$4 sm:$0xff]   ;;  %v2862_v6 = vld [vmem:[%s3296_s23 + $0x324] ss:$16 sps:$4 sm:$0xff]  }
 0x118   : > { %1765 = vmatprep.mubr.bf16.mxu1 %v2768_v7  ;;  %v2864_v7 = vld [vmem:[%s3296_s23 + $0x32c] ss:$16 sps:$4 sm:$0xff]  }
 0x11e   : > { %1477 = vmatmul.mubr.bf16.gmra.mrb[36].mxu0 %v2770_v8  ;;  %v2866_v8 = vld [vmem:[%s3296_s23 + $0x320] ss:$16 sps:$4 sm:$0xff]  }
 0x11f   : > { %1766 = vmatmul.mubr.bf16.gmra.mrb[36].mxu1 %v2771_v9  ;;  %1484 = vmatprep.mubr.bf16.mxu0 %v2772_v10  ;;  %v2867_v9 = vld [vmem:[%s3296_s23 + $0x328] ss:$16 sps:$4 sm:$0xff]   ;;  %v2868_v10 = vld [vmem:[%s3296_s23 + $0x344] ss:$16 sps:$4 sm:$0xff]  }
 0x120   : > { %1773 = vmatprep.mubr.bf16.mxu1 %v2774_v11  ;;  %v2870_v11 = vld [vmem:[%s3296_s23 + $0x34c] ss:$16 sps:$4 sm:$0xff]  }
 0x126   : > { %1485 = vmatmul.mubr.bf16.gmra.mrb[40].mxu0 %v2776_v12  ;;  %v2872_v12 = vld [vmem:[%s3296_s23 + $0x340] ss:$16 sps:$4 sm:$0xff]  }
 0x127   : > { %1774 = vmatmul.mubr.bf16.gmra.mrb[40].mxu1 %v2777_v13  ;;  %1492 = vmatprep.mubr.bf16.mxu0 %v2778_v14  ;;  %v2873_v13 = vld [vmem:[%s3296_s23 + $0x348] ss:$16 sps:$4 sm:$0xff]   ;;  %v2874_v14 = vld [vmem:[%s3296_s23 + $0x364] ss:$16 sps:$4 sm:$0xff]  }
 0x128   : > { %1781 = vmatprep.mubr.bf16.mxu1 %v2780_v15  ;;  %v2876_v15 = vld [vmem:[%s3296_s23 + $0x36c] ss:$16 sps:$4 sm:$0xff]  }
 0x12e   : > { %1493 = vmatmul.mubr.bf16.gmra.mrb[44].mxu0 %v2782_v16 }
 0x12f   : > { %1782 = vmatmul.mubr.bf16.gmra.mrb[44].mxu1 %v2783_v17  ;;  %1500 = vmatprep.mubr.bf16.mxu0 %v2784_v18  ;;  %v348_v17 = vld [vmem:[%s3305_s30] sm:$0xff] }
 0x130   : > { %1789 = vmatprep.mubr.bf16.mxu1 %v2786_v19 }
 0x136   : > { %1501 = vmatmul.mubr.bf16.gmra.mrb[48].mxu0 %v2788_v20  ;;  %v2878_v20 = vld [vmem:[%s3296_s23 + $0x360] ss:$16 sps:$4 sm:$0xff]  }
 0x137   : > { %1790 = vmatmul.mubr.bf16.gmra.mrb[48].mxu1 %v2789_v21  ;;  %1508 = vmatprep.mubr.bf16.mxu0 %v2790_v22 }
 0x138   : > { %1797 = vmatprep.mubr.bf16.mxu1 %v2792_v23 }
 0x13e   : > { %1509 = vmatmul.mubr.bf16.gmra.mrb[52].mxu0 %v2794_v24  ;;  %v2879_v24 = vld [vmem:[%s3296_s23 + $0x368] ss:$16 sps:$4 sm:$0xff]  }
 0x13f   : > { %1798 = vmatmul.mubr.bf16.gmra.mrb[52].mxu1 %v2795_v25  ;;  %1516 = vmatprep.mubr.bf16.mxu0 %v2796_v26  ;;  %v2880_v25 = vld [vmem:[%s3296_s23 + $0x384] ss:$16 sps:$4 sm:$0xff]   ;;  %v349_v26 = vld [vmem:[%s3305_s30 + $0x8] sm:$0xff] }
 0x140   : > { %1805 = vmatprep.mubr.bf16.mxu1 %v2798_v27 }
 0x146   : > { %1517 = vmatmul.mubr.bf16.gmra.mrb[56].mxu0 %v2800_v28 }
 0x147   : > { %1806 = vmatmul.mubr.bf16.gmra.mrb[56].mxu1 %v2801_v29  ;;  %1524 = vmatprep.mubr.bf16.mxu0 %v2802_v30  ;;  %v2882_v29 = vld [vmem:[%s3296_s23 + $0x38c] ss:$16 sps:$4 sm:$0xff]  }
 0x148   : > { %1813 = vmatprep.mubr.bf16.mxu1 %v2804_v31 }
 0x14e   : > { %1525 = vmatmul.mubr.bf16.gmra.mrb[60].mxu0 %v2806_v32 }
 0x14f   : > { %1814 = vmatmul.mubr.bf16.gmra.mrb[60].mxu1 %v2807_v33  ;;  %1532 = vmatprep.mubr.bf16.mxu0 %v2808_v34 }
 0x150   : > { %1821 = vmatprep.mubr.bf16.mxu1 %v2810_v35  ;;  %v350_v35 = vld [vmem:[%s3305_s30 + $0x10] sm:$0xff] }
 0x156   : > { %1533 = vmatmul.mubr.bf16.gmra.mrb[64].mxu0 %v2812_v36 }
 0x157   : > { %1822 = vmatmul.mubr.bf16.gmra.mrb[64].mxu1 %v2813_v37  ;;  %1540 = vmatprep.mubr.bf16.mxu0 %v2814_v38  ;;  %v2884_v38 = vld [vmem:[%s3296_s23 + $0x380] ss:$16 sps:$4 sm:$0xff]  }
 0x158   : > { %1829 = vmatprep.mubr.bf16.mxu1 %v2816_v39 }
 0x15e   : > { %1541 = vmatmul.mubr.bf16.gmra.mrb[68].mxu0 %v2818_v40 }
 0x15f   : > { %1830 = vmatmul.mubr.bf16.gmra.mrb[68].mxu1 %v2819_v41  ;;  %1548 = vmatprep.mubr.bf16.mxu0 %v2820_v42  ;;  %v2885_v42 = vld [vmem:[%s3296_s23 + $0x388] ss:$16 sps:$4 sm:$0xff]  }
 0x160   : > { %1837 = vmatprep.mubr.bf16.mxu1 %v2822_v43  ;;  %v2886_v43 = vld [vmem:[%s3296_s23 + $0x3a4] ss:$16 sps:$4 sm:$0xff]  }
 0x166   : > { %1549 = vmatmul.mubr.bf16.gmra.mrb[72].mxu0 %v2824_v44  ;;  %v351_v44 = vld [vmem:[%s3305_s30 + $0x18] sm:$0xff] }
 0x167   : > { %1838 = vmatmul.mubr.bf16.gmra.mrb[72].mxu1 %v2825_v45  ;;  %1556 = vmatprep.mubr.bf16.mxu0 %v2826_v46 }
 0x168   : > { %1845 = vmatprep.mubr.bf16.mxu1 %v2828_v47  ;;  %v2888_v47 = vld [vmem:[%s3296_s23 + $0x3ac] ss:$16 sps:$4 sm:$0xff]  }
 0x16e   : > { %1557 = vmatmul.mubr.bf16.gmra.mrb[76].mxu0 %v2830_v48 }
 0x16f   : > { %1846 = vmatmul.mubr.bf16.gmra.mrb[76].mxu1 %v2831_v49  ;;  %1564 = vmatprep.mubr.bf16.mxu0 %v2832_v50 }
 0x170   : > { %1853 = vmatprep.mubr.bf16.mxu1 %v2834_v51 }
 0x176   : > { %1565 = vmatmul.mubr.bf16.gmra.mrb[80].mxu0 %v2836_v52 }
 0x177   : > { %1854 = vmatmul.mubr.bf16.gmra.mrb[80].mxu1 %v2837_v53  ;;  %1572 = vmatprep.mubr.bf16.mxu0 %v2838_v54  ;;  %v352_v53 = vld [vmem:[%s3305_s30 + $0x20] sm:$0xff] }
 0x178   : > { %1861 = vmatprep.mubr.bf16.mxu1 %v2840_v55 }
 0x17e   : > { %1573 = vmatmul.mubr.bf16.gmra.mrb[84].mxu0 %v2842_v56  ;;  %v2890_v56 = vld [vmem:[%s3296_s23 + $0x3a0] ss:$16 sps:$4 sm:$0xff]  }
 0x17f   : > { %1862 = vmatmul.mubr.bf16.gmra.mrb[84].mxu1 %v2843_v57  ;;  %1580 = vmatprep.mubr.bf16.mxu0 %v2844_v58 }
 0x180   : > { %1869 = vmatprep.mubr.bf16.mxu1 %v2846_v59 }
 0x186   : > { %1581 = vmatmul.mubr.bf16.gmra.mrb[88].mxu0 %v2848_v60  ;;  %v2891_v60 = vld [vmem:[%s3296_s23 + $0x3a8] ss:$16 sps:$4 sm:$0xff]  }
 0x187   : > { %1870 = vmatmul.mubr.bf16.gmra.mrb[88].mxu1 %v2849_v61  ;;  %1588 = vmatprep.mubr.bf16.mxu0 %v2850_v62  ;;  %v2892_v61 = vld [vmem:[%s3296_s23 + $0x3c4] ss:$16 sps:$4 sm:$0xff]   ;;  %v353_v62 = vld [vmem:[%s3305_s30 + $0x28] sm:$0xff] }
 0x188   : > { %1877 = vmatprep.mubr.bf16.mxu1 %v2852_v63 }
 0x18e   : > { %1589 = vmatmul.mubr.bf16.gmra.mrb[92].mxu0 %v2854_v0 }
 0x18f   : > { %1878 = vmatmul.mubr.bf16.gmra.mrb[92].mxu1 %v2855_v1  ;;  %1596 = vmatprep.mubr.bf16.mxu0 %v2856_v2  ;;  %v2894_v1 = vld [vmem:[%s3296_s23 + $0x3cc] ss:$16 sps:$4 sm:$0xff]  }
 0x190   : > { %1885 = vmatprep.mubr.bf16.mxu1 %v2858_v3 }
 0x196   : > { %1597 = vmatmul.mubr.bf16.gmra.mrb[96].mxu0 %v2860_v4 }
 0x197   : > { %1886 = vmatmul.mubr.bf16.gmra.mrb[96].mxu1 %v2861_v5  ;;  %1604 = vmatprep.mubr.bf16.mxu0 %v2862_v6 }
 0x198   : > { %1893 = vmatprep.mubr.bf16.mxu1 %v2864_v7  ;;  %v354_v7 = vld [vmem:[%s3305_s30 + $0x30] sm:$0xff] }
 0x19e   : > { %1605 = vmatmul.mubr.bf16.gmra.mrb[100].mxu0 %v2866_v8 }
 0x19f   : > { %1894 = vmatmul.mubr.bf16.gmra.mrb[100].mxu1 %v2867_v9  ;;  %1612 = vmatprep.mubr.bf16.mxu0 %v2868_v10  ;;  %v2896_v10 = vld [vmem:[%s3296_s23 + $0x3c0] ss:$16 sps:$4 sm:$0xff]  }
 0x1a0   : > { %1901 = vmatprep.mubr.bf16.mxu1 %v2870_v11 }
 0x1a6   : > { %1613 = vmatmul.mubr.bf16.gmra.mrb[104].mxu0 %v2872_v12 }
 0x1a7   : > { %1902 = vmatmul.mubr.bf16.gmra.mrb[104].mxu1 %v2873_v13  ;;  %1620 = vmatprep.mubr.bf16.mxu0 %v2874_v14  ;;  %v2897_v14 = vld [vmem:[%s3296_s23 + $0x3c8] ss:$16 sps:$4 sm:$0xff]  }
 0x1a8   : > { %1909 = vmatprep.mubr.bf16.mxu1 %v2876_v15  ;;  %v2898_v15 = vld [vmem:[%s3296_s23 + $0x3e4] ss:$16 sps:$4 sm:$0xff]  }
 0x1a9   : > { %v1406_v16 = vpop.f32.mrb[0].mxu0 }
 0x1aa   : > { %v1695_v18 = vpop.f32.mrb[0].mxu1  ;;  %v1408_v19 = vpop.f32.mrb[1].mxu0 }
 0x1ab   : > { %v1696_v21 = vadd.f32 %v1695_v18, %v1406_v16  ;;  %v1697_v22 = vpop.f32.mrb[1].mxu1  ;;  %v1409_v23 = vpop.f32.mrb[2].mxu0  ;;  %v355_v16 = vld [vmem:[%s3305_s30 + $0x38] sm:$0xff] }
 0x1ac   : > { %v1698_v27 = vpop.f32.mrb[2].mxu1  ;;  %v1411_v28 = vpop.f32.mrb[3].mxu0  ;;  %v2900_v19 = vld [vmem:[%s3296_s23 + $0x3ec] ss:$16 sps:$4 sm:$0xff]  }
 0x1ad   : > { %v1950_v30 = vadd.f32 %v1696_v21, %v348_v17  ;;  %v1699_v31 = vadd.f32 %v1698_v27, %v1409_v23  ;;  %v1700_v32 = vpop.f32.mrb[3].mxu1  ;;  %v2902_v28 = vld [vmem:[%s3296_s23 + $0x3e0] ss:$16 sps:$4 sm:$0xff]  }
 0x1ae   : > { %1621 = vmatmul.mubr.bf16.gmra.mrb[108].mxu0 %v2878_v20  ;;  %v2903_v32 = vld [vmem:[%s3296_s23 + $0x3e8] ss:$16 sps:$4 sm:$0xff]  }
 0x1af   : > { %2014 = vst [vmem:[%s3305_s30] sm:$0xff] %v1950_v30  ;;  %v1951_v33 = vadd.f32 %v1699_v31, %v349_v26  ;;  %1910 = vmatmul.mubr.bf16.gmra.mrb[108].mxu1 %v2879_v24  ;;  %1628 = vmatprep.mubr.bf16.mxu0 %v2880_v25  ;;  %v356_v25 = vld [vmem:[%s3305_s30 + $0x40] sm:$0xff] }
 0x1b0   : > { %1917 = vmatprep.mubr.bf16.mxu1 %v2882_v29 }
 0x1b1   : > { %2015 = vst [vmem:[%s3305_s30 + $0x8] sm:$0xff] %v1951_v33  ;;  %v1414_v34 = vpop.f32.mrb[4].mxu0  ;;  %v357_v33 = vld [vmem:[%s3305_s30 + $0x48] sm:$0xff] }
 0x1b2   : > { %v1703_v36 = vpop.f32.mrb[4].mxu1  ;;  %v1416_v37 = vpop.f32.mrb[5].mxu0 }
 0x1b3   : > { %v1704_v39 = vadd.f32 %v1703_v36, %v1414_v34  ;;  %v1705_v40 = vpop.f32.mrb[5].mxu1  ;;  %v1417_v41 = vpop.f32.mrb[6].mxu0 }
 0x1b4   : > { %v1706_v45 = vpop.f32.mrb[6].mxu1  ;;  %v1419_v46 = vpop.f32.mrb[7].mxu0 }
 0x1b5   : > { %v1952_v48 = vadd.f32 %v1704_v39, %v350_v35  ;;  %v1707_v49 = vadd.f32 %v1706_v45, %v1417_v41  ;;  %v1708_v50 = vpop.f32.mrb[7].mxu1  ;;  %v358_v41 = vld [vmem:[%s3305_s30 + $0x50] sm:$0xff] }
 0x1b6   : > { %1629 = vmatmul.mubr.bf16.gmra.mrb[112].mxu0 %v2884_v38 }
 0x1b7   : > { %2016 = vst [vmem:[%s3305_s30 + $0x10] sm:$0xff] %v1952_v48  ;;  %v1953_v51 = vadd.f32 %v1707_v49, %v351_v44  ;;  %1918 = vmatmul.mubr.bf16.gmra.mrb[112].mxu1 %v2885_v42  ;;  %1636 = vmatprep.mubr.bf16.mxu0 %v2886_v43 }
 0x1b8   : > { %1925 = vmatprep.mubr.bf16.mxu1 %v2888_v47  ;;  %v359_v47 = vld [vmem:[%s3305_s30 + $0x58] sm:$0xff] }
 0x1b9   : > { %2017 = vst [vmem:[%s3305_s30 + $0x18] sm:$0xff] %v1953_v51  ;;  %v1422_v52 = vpop.f32.mrb[8].mxu0 }
 0x1ba   : > { %v1711_v54 = vpop.f32.mrb[8].mxu1  ;;  %v1424_v55 = vpop.f32.mrb[9].mxu0 }
 0x1bb   : > { %v1712_v57 = vadd.f32 %v1711_v54, %v1422_v52  ;;  %v1713_v58 = vpop.f32.mrb[9].mxu1  ;;  %v1425_v59 = vpop.f32.mrb[10].mxu0  ;;  %v360_v55 = vld [vmem:[%s3305_s30 + $0x60] sm:$0xff] }
 0x1bc   : > { %v1714_v63 = vpop.f32.mrb[10].mxu1  ;;  %v1427_v0 = vpop.f32.mrb[11].mxu0 }
 0x1bd   : > { %v1954_v2 = vadd.f32 %v1712_v57, %v352_v53  ;;  %v1715_v3 = vadd.f32 %v1714_v63, %v1425_v59  ;;  %v1716_v4 = vpop.f32.mrb[11].mxu1 }
 0x1be   : > { %1637 = vmatmul.mubr.bf16.gmra.mrb[116].mxu0 %v2890_v56 }
 0x1bf   : > { %2018 = vst [vmem:[%s3305_s30 + $0x20] sm:$0xff] %v1954_v2  ;;  %v1955_v5 = vadd.f32 %v1715_v3, %v353_v62  ;;  %1926 = vmatmul.mubr.bf16.gmra.mrb[116].mxu1 %v2891_v60  ;;  %1644 = vmatprep.mubr.bf16.mxu0 %v2892_v61  ;;  %v361_v61 = vld [vmem:[%s3305_s30 + $0x68] sm:$0xff] }
 0x1c0   : > { %1933 = vmatprep.mubr.bf16.mxu1 %v2894_v1 }
 0x1c1   : > { %2019 = vst [vmem:[%s3305_s30 + $0x28] sm:$0xff] %v1955_v5  ;;  %v1430_v6 = vpop.f32.mrb[12].mxu0  ;;  %v362_v5 = vld [vmem:[%s3305_s30 + $0x70] sm:$0xff] }
 0x1c2   : > { %v1719_v8 = vpop.f32.mrb[12].mxu1  ;;  %v1432_v9 = vpop.f32.mrb[13].mxu0 }
 0x1c3   : > { %v1720_v11 = vadd.f32 %v1719_v8, %v1430_v6  ;;  %v1721_v12 = vpop.f32.mrb[13].mxu1  ;;  %v1433_v13 = vpop.f32.mrb[14].mxu0 }
 0x1c4   : > { %v1722_v17 = vpop.f32.mrb[14].mxu1  ;;  %v1435_v18 = vpop.f32.mrb[15].mxu0 }
 0x1c5   : > { %v1956_v20 = vadd.f32 %v1720_v11, %v354_v7  ;;  %v1723_v21 = vadd.f32 %v1722_v17, %v1433_v13  ;;  %v1724_v22 = vpop.f32.mrb[15].mxu1  ;;  %v363_v11 = vld [vmem:[%s3305_s30 + $0x78] sm:$0xff] }
 0x1c6   : > { %1645 = vmatmul.mubr.bf16.gmra.mrb[120].mxu0 %v2896_v10 }
 0x1c7   : > { %2020 = vst [vmem:[%s3305_s30 + $0x30] sm:$0xff] %v1956_v20  ;;  %v1957_v23 = vadd.f32 %v1723_v21, %v355_v16  ;;  %1934 = vmatmul.mubr.bf16.gmra.mrb[120].mxu1 %v2897_v14  ;;  %1652 = vmatprep.mubr.bf16.mxu0 %v2898_v15 }
 0x1c8   : > { %1941 = vmatprep.mubr.bf16.mxu1 %v2900_v19  ;;  %v364_v19 = vld [vmem:[%s3305_s30 + $0x80] sm:$0xff] }
 0x1c9   : > { %2021 = vst [vmem:[%s3305_s30 + $0x38] sm:$0xff] %v1957_v23  ;;  %v1438_v24 = vpop.f32.mrb[16].mxu0 }
 0x1ca   : > { %v1727_v26 = vpop.f32.mrb[16].mxu1  ;;  %v1440_v27 = vpop.f32.mrb[17].mxu0 }
 0x1cb   : > { %v1728_v29 = vadd.f32 %v1727_v26, %v1438_v24  ;;  %v1729_v30 = vpop.f32.mrb[17].mxu1  ;;  %v1441_v31 = vpop.f32.mrb[18].mxu0 }
 0x1cc   : > { %v1730_v34 = vpop.f32.mrb[18].mxu1  ;;  %v1443_v35 = vpop.f32.mrb[19].mxu0 }
 0x1cd   : > { %v1958_v36 = vadd.f32 %v1728_v29, %v356_v25  ;;  %v1731_v37 = vadd.f32 %v1730_v34, %v1441_v31  ;;  %v1732_v38 = vpop.f32.mrb[19].mxu1  ;;  %v365_v25 = vld [vmem:[%s3305_s30 + $0x88] sm:$0xff] }
 0x1ce   : > { %1653 = vmatmul.mubr.bf16.gmra.mrb[124].mxu0 %v2902_v28 }
 0x1cf   : > { %2022 = vst [vmem:[%s3305_s30 + $0x40] sm:$0xff] %v1958_v36  ;;  %v1959_v39 = vadd.f32 %v1731_v37, %v357_v33  ;;  %1942 = vmatmul.mubr.bf16.gmra.mrb[124].mxu1 %v2903_v32  ;;  %v366_v33 = vld [vmem:[%s3305_s30 + $0x90] sm:$0xff] }
 0x1d1   : > { %2023 = vst [vmem:[%s3305_s30 + $0x48] sm:$0xff] %v1959_v39  ;;  %v1446_v40 = vpop.f32.mrb[20].mxu0  ;;  %v367_v39 = vld [vmem:[%s3305_s30 + $0x98] sm:$0xff] }
 0x1d2   : > { %v1735_v42 = vpop.f32.mrb[20].mxu1  ;;  %v1448_v43 = vpop.f32.mrb[21].mxu0 }
 0x1d3   : > { %v1736_v44 = vadd.f32 %v1735_v42, %v1446_v40  ;;  %v1737_v45 = vpop.f32.mrb[21].mxu1  ;;  %v1449_v46 = vpop.f32.mrb[22].mxu0 }
 0x1d4   : > { %v1738_v48 = vpop.f32.mrb[22].mxu1  ;;  %v1451_v49 = vpop.f32.mrb[23].mxu0 }
 0x1d5   : > { %v1960_v50 = vadd.f32 %v1736_v44, %v358_v41  ;;  %v1739_v51 = vadd.f32 %v1738_v48, %v1449_v46  ;;  %v1740_v52 = vpop.f32.mrb[23].mxu1 }
 0x1d7   : > { %2024 = vst [vmem:[%s3305_s30 + $0x50] sm:$0xff] %v1960_v50  ;;  %v1961_v53 = vadd.f32 %v1739_v51, %v359_v47  ;;  %v368_v47 = vld [vmem:[%s3305_s30 + $0xa0] sm:$0xff] }
 0x1d9   : > { %2025 = vst [vmem:[%s3305_s30 + $0x58] sm:$0xff] %v1961_v53  ;;  %v1454_v54 = vpop.f32.mrb[24].mxu0  ;;  %v369_v53 = vld [vmem:[%s3305_s30 + $0xa8] sm:$0xff] }
 0x1da   : > { %v1743_v56 = vpop.f32.mrb[24].mxu1  ;;  %v1456_v57 = vpop.f32.mrb[25].mxu0 }
 0x1db   : > { %v1744_v58 = vadd.f32 %v1743_v56, %v1454_v54  ;;  %v1745_v59 = vpop.f32.mrb[25].mxu1  ;;  %v1457_v60 = vpop.f32.mrb[26].mxu0 }
 0x1dc   : > { %v1746_v62 = vpop.f32.mrb[26].mxu1  ;;  %v1459_v63 = vpop.f32.mrb[27].mxu0 }
 0x1dd   : > { %v1962_v0 = vadd.f32 %v1744_v58, %v360_v55  ;;  %v1747_v1 = vadd.f32 %v1746_v62, %v1457_v60  ;;  %v1748_v2 = vpop.f32.mrb[27].mxu1 }
 0x1df   : > { %2026 = vst [vmem:[%s3305_s30 + $0x60] sm:$0xff] %v1962_v0  ;;  %v1963_v3 = vadd.f32 %v1747_v1, %v361_v61  ;;  %v370_v61 = vld [vmem:[%s3305_s30 + $0xb0] sm:$0xff] }
 0x1e1   : > { %2027 = vst [vmem:[%s3305_s30 + $0x68] sm:$0xff] %v1963_v3  ;;  %v1462_v4 = vpop.f32.mrb[28].mxu0  ;;  %v371_v3 = vld [vmem:[%s3305_s30 + $0xb8] sm:$0xff] }
 0x1e2   : > { %v1751_v6 = vpop.f32.mrb[28].mxu1  ;;  %v1464_v7 = vpop.f32.mrb[29].mxu0 }
 0x1e3   : > { %v1752_v8 = vadd.f32 %v1751_v6, %v1462_v4  ;;  %v1753_v9 = vpop.f32.mrb[29].mxu1  ;;  %v1465_v10 = vpop.f32.mrb[30].mxu0 }
 0x1e4   : > { %v1754_v12 = vpop.f32.mrb[30].mxu1  ;;  %v1467_v13 = vpop.f32.mrb[31].mxu0 }
 0x1e5   : > { %v1964_v14 = vadd.f32 %v1752_v8, %v362_v5  ;;  %v1755_v15 = vadd.f32 %v1754_v12, %v1465_v10  ;;  %v1756_v16 = vpop.f32.mrb[31].mxu1 }
 0x1e7   : > { %2028 = vst [vmem:[%s3305_s30 + $0x70] sm:$0xff] %v1964_v14  ;;  %v1965_v17 = vadd.f32 %v1755_v15, %v363_v11  ;;  %v372_v11 = vld [vmem:[%s3305_s30 + $0xc0] sm:$0xff] }
 0x1e9   : > { %2029 = vst [vmem:[%s3305_s30 + $0x78] sm:$0xff] %v1965_v17  ;;  %v1470_v18 = vpop.f32.mrb[32].mxu0  ;;  %v373_v17 = vld [vmem:[%s3305_s30 + $0xc8] sm:$0xff] }
 0x1ea   : > { %v1759_v20 = vpop.f32.mrb[32].mxu1  ;;  %v1472_v21 = vpop.f32.mrb[33].mxu0 }
 0x1eb   : > { %v1760_v22 = vadd.f32 %v1759_v20, %v1470_v18  ;;  %v1761_v23 = vpop.f32.mrb[33].mxu1  ;;  %v1473_v24 = vpop.f32.mrb[34].mxu0 }
 0x1ec   : > { %v1762_v26 = vpop.f32.mrb[34].mxu1  ;;  %v1475_v27 = vpop.f32.mrb[35].mxu0 }
 0x1ed   : > { %v1966_v28 = vadd.f32 %v1760_v22, %v364_v19  ;;  %v1763_v29 = vadd.f32 %v1762_v26, %v1473_v24  ;;  %v1764_v30 = vpop.f32.mrb[35].mxu1 }
 0x1ef   : > { %2030 = vst [vmem:[%s3305_s30 + $0x80] sm:$0xff] %v1966_v28  ;;  %v1967_v31 = vadd.f32 %v1763_v29, %v365_v25  ;;  %v374_v25 = vld [vmem:[%s3305_s30 + $0xd0] sm:$0xff] }
 0x1f1   : > { %2031 = vst [vmem:[%s3305_s30 + $0x88] sm:$0xff] %v1967_v31  ;;  %v1478_v32 = vpop.f32.mrb[36].mxu0  ;;  %v375_v31 = vld [vmem:[%s3305_s30 + $0xd8] sm:$0xff] }
 0x1f2   : > { %v1767_v34 = vpop.f32.mrb[36].mxu1  ;;  %v1480_v35 = vpop.f32.mrb[37].mxu0 }
 0x1f3   : > { %v1768_v36 = vadd.f32 %v1767_v34, %v1478_v32  ;;  %v1769_v37 = vpop.f32.mrb[37].mxu1  ;;  %v1481_v38 = vpop.f32.mrb[38].mxu0 }
 0x1f4   : > { %v1770_v40 = vpop.f32.mrb[38].mxu1  ;;  %v1483_v41 = vpop.f32.mrb[39].mxu0 }
 0x1f5   : > { %v1968_v42 = vadd.f32 %v1768_v36, %v366_v33  ;;  %v1771_v43 = vadd.f32 %v1770_v40, %v1481_v38  ;;  %v1772_v44 = vpop.f32.mrb[39].mxu1 }
 0x1f7   : > { %2032 = vst [vmem:[%s3305_s30 + $0x90] sm:$0xff] %v1968_v42  ;;  %v1969_v45 = vadd.f32 %v1771_v43, %v367_v39  ;;  %v376_v39 = vld [vmem:[%s3305_s30 + $0xe0] sm:$0xff] }
 0x1f9   : > { %2033 = vst [vmem:[%s3305_s30 + $0x98] sm:$0xff] %v1969_v45  ;;  %v1486_v46 = vpop.f32.mrb[40].mxu0  ;;  %v377_v45 = vld [vmem:[%s3305_s30 + $0xe8] sm:$0xff] }
 0x1fa   : > { %v1775_v48 = vpop.f32.mrb[40].mxu1  ;;  %v1488_v49 = vpop.f32.mrb[41].mxu0 }
 0x1fb   : > { %v1776_v50 = vadd.f32 %v1775_v48, %v1486_v46  ;;  %v1777_v51 = vpop.f32.mrb[41].mxu1  ;;  %v1489_v52 = vpop.f32.mrb[42].mxu0 }
 0x1fc   : > { %v1778_v54 = vpop.f32.mrb[42].mxu1  ;;  %v1491_v55 = vpop.f32.mrb[43].mxu0 }
 0x1fd   : > { %v1970_v56 = vadd.f32 %v1776_v50, %v368_v47  ;;  %v1779_v57 = vadd.f32 %v1778_v54, %v1489_v52  ;;  %v1780_v58 = vpop.f32.mrb[43].mxu1 }
 0x1ff   : > { %2034 = vst [vmem:[%s3305_s30 + $0xa0] sm:$0xff] %v1970_v56  ;;  %v1971_v59 = vadd.f32 %v1779_v57, %v369_v53  ;;  %v378_v53 = vld [vmem:[%s3305_s30 + $0xf0] sm:$0xff] }
 0x201   : > { %2035 = vst [vmem:[%s3305_s30 + $0xa8] sm:$0xff] %v1971_v59  ;;  %v1494_v60 = vpop.f32.mrb[44].mxu0  ;;  %v379_v59 = vld [vmem:[%s3305_s30 + $0xf8] sm:$0xff] }
 0x202   : > { %v1783_v62 = vpop.f32.mrb[44].mxu1  ;;  %v1496_v63 = vpop.f32.mrb[45].mxu0 }
 0x203   : > { %v1784_v0 = vadd.f32 %v1783_v62, %v1494_v60  ;;  %v1785_v1 = vpop.f32.mrb[45].mxu1  ;;  %v1497_v2 = vpop.f32.mrb[46].mxu0 }
 0x204   : > { %v1786_v4 = vpop.f32.mrb[46].mxu1  ;;  %v1499_v5 = vpop.f32.mrb[47].mxu0 }
 0x205   : > { %v1972_v6 = vadd.f32 %v1784_v0, %v370_v61  ;;  %v1787_v7 = vadd.f32 %v1786_v4, %v1497_v2  ;;  %v1788_v8 = vpop.f32.mrb[47].mxu1 }
 0x207   : > { %2036 = vst [vmem:[%s3305_s30 + $0xb0] sm:$0xff] %v1972_v6  ;;  %v1973_v9 = vadd.f32 %v1787_v7, %v371_v3  ;;  %v380_v3 = vld [vmem:[%s3305_s30 + $0x100] sm:$0xff] }
 0x209   : > { %2037 = vst [vmem:[%s3305_s30 + $0xb8] sm:$0xff] %v1973_v9  ;;  %v1502_v10 = vpop.f32.mrb[48].mxu0  ;;  %v381_v9 = vld [vmem:[%s3305_s30 + $0x108] sm:$0xff] }
 0x20a   : > { %v1791_v12 = vpop.f32.mrb[48].mxu1  ;;  %v1504_v13 = vpop.f32.mrb[49].mxu0 }
 0x20b   : > { %v1792_v14 = vadd.f32 %v1791_v12, %v1502_v10  ;;  %v1793_v15 = vpop.f32.mrb[49].mxu1  ;;  %v1505_v16 = vpop.f32.mrb[50].mxu0 }
 0x20c   : > { %v1794_v18 = vpop.f32.mrb[50].mxu1  ;;  %v1507_v19 = vpop.f32.mrb[51].mxu0 }
 0x20d   : > { %v1974_v20 = vadd.f32 %v1792_v14, %v372_v11  ;;  %v1795_v21 = vadd.f32 %v1794_v18, %v1505_v16  ;;  %v1796_v22 = vpop.f32.mrb[51].mxu1 }
 0x20f   : > { %2038 = vst [vmem:[%s3305_s30 + $0xc0] sm:$0xff] %v1974_v20  ;;  %v1975_v23 = vadd.f32 %v1795_v21, %v373_v17  ;;  %v382_v17 = vld [vmem:[%s3305_s30 + $0x110] sm:$0xff] }
 0x211   : > { %2039 = vst [vmem:[%s3305_s30 + $0xc8] sm:$0xff] %v1975_v23  ;;  %v1510_v24 = vpop.f32.mrb[52].mxu0  ;;  %v383_v23 = vld [vmem:[%s3305_s30 + $0x118] sm:$0xff] }
 0x212   : > { %v1799_v26 = vpop.f32.mrb[52].mxu1  ;;  %v1512_v27 = vpop.f32.mrb[53].mxu0 }
 0x213   : > { %v1800_v28 = vadd.f32 %v1799_v26, %v1510_v24  ;;  %v1801_v29 = vpop.f32.mrb[53].mxu1  ;;  %v1513_v30 = vpop.f32.mrb[54].mxu0 }
 0x214   : > { %v1802_v32 = vpop.f32.mrb[54].mxu1  ;;  %v1515_v33 = vpop.f32.mrb[55].mxu0 }
 0x215   : > { %v1976_v34 = vadd.f32 %v1800_v28, %v374_v25  ;;  %v1803_v35 = vadd.f32 %v1802_v32, %v1513_v30  ;;  %v1804_v36 = vpop.f32.mrb[55].mxu1 }
 0x217   : > { %2040 = vst [vmem:[%s3305_s30 + $0xd0] sm:$0xff] %v1976_v34  ;;  %v1977_v37 = vadd.f32 %v1803_v35, %v375_v31  ;;  %v384_v31 = vld [vmem:[%s3305_s30 + $0x120] sm:$0xff] }
 0x219   : > { %2041 = vst [vmem:[%s3305_s30 + $0xd8] sm:$0xff] %v1977_v37  ;;  %v1518_v38 = vpop.f32.mrb[56].mxu0  ;;  %v385_v37 = vld [vmem:[%s3305_s30 + $0x128] sm:$0xff] }
 0x21a   : > { %v1807_v40 = vpop.f32.mrb[56].mxu1  ;;  %v1520_v41 = vpop.f32.mrb[57].mxu0 }
 0x21b   : > { %v1808_v42 = vadd.f32 %v1807_v40, %v1518_v38  ;;  %v1809_v43 = vpop.f32.mrb[57].mxu1  ;;  %v1521_v44 = vpop.f32.mrb[58].mxu0 }
 0x21c   : > { %v1810_v46 = vpop.f32.mrb[58].mxu1  ;;  %v1523_v47 = vpop.f32.mrb[59].mxu0 }
 0x21d   : > { %v1978_v48 = vadd.f32 %v1808_v42, %v376_v39  ;;  %v1811_v49 = vadd.f32 %v1810_v46, %v1521_v44  ;;  %v1812_v50 = vpop.f32.mrb[59].mxu1 }
 0x21f   : > { %2042 = vst [vmem:[%s3305_s30 + $0xe0] sm:$0xff] %v1978_v48  ;;  %v1979_v51 = vadd.f32 %v1811_v49, %v377_v45  ;;  %v386_v45 = vld [vmem:[%s3305_s30 + $0x130] sm:$0xff] }
 0x221   : > { %2043 = vst [vmem:[%s3305_s30 + $0xe8] sm:$0xff] %v1979_v51  ;;  %v1526_v52 = vpop.f32.mrb[60].mxu0  ;;  %v387_v51 = vld [vmem:[%s3305_s30 + $0x138] sm:$0xff] }
 0x222   : > { %v1815_v54 = vpop.f32.mrb[60].mxu1  ;;  %v1528_v55 = vpop.f32.mrb[61].mxu0 }
 0x223   : > { %v1816_v56 = vadd.f32 %v1815_v54, %v1526_v52  ;;  %v1817_v57 = vpop.f32.mrb[61].mxu1  ;;  %v1529_v58 = vpop.f32.mrb[62].mxu0 }
 0x224   : > { %v1818_v60 = vpop.f32.mrb[62].mxu1  ;;  %v1531_v61 = vpop.f32.mrb[63].mxu0 }
 0x225   : > { %v1980_v62 = vadd.f32 %v1816_v56, %v378_v53  ;;  %v1819_v63 = vadd.f32 %v1818_v60, %v1529_v58  ;;  %v1820_v0 = vpop.f32.mrb[63].mxu1 }
 0x227   : > { %2044 = vst [vmem:[%s3305_s30 + $0xf0] sm:$0xff] %v1980_v62  ;;  %v1981_v1 = vadd.f32 %v1819_v63, %v379_v59  ;;  %v388_v59 = vld [vmem:[%s3305_s30 + $0x140] sm:$0xff] }
 0x229   : > { %2045 = vst [vmem:[%s3305_s30 + $0xf8] sm:$0xff] %v1981_v1  ;;  %v1534_v2 = vpop.f32.mrb[64].mxu0  ;;  %v389_v1 = vld [vmem:[%s3305_s30 + $0x148] sm:$0xff] }
 0x22a   : > { %v1823_v4 = vpop.f32.mrb[64].mxu1  ;;  %v1536_v5 = vpop.f32.mrb[65].mxu0 }
 0x22b   : > { %v1824_v6 = vadd.f32 %v1823_v4, %v1534_v2  ;;  %v1825_v7 = vpop.f32.mrb[65].mxu1  ;;  %v1537_v8 = vpop.f32.mrb[66].mxu0 }
 0x22c   : > { %v1826_v10 = vpop.f32.mrb[66].mxu1  ;;  %v1539_v11 = vpop.f32.mrb[67].mxu0 }
 0x22d   : > { %v1982_v12 = vadd.f32 %v1824_v6, %v380_v3  ;;  %v1827_v13 = vadd.f32 %v1826_v10, %v1537_v8  ;;  %v1828_v14 = vpop.f32.mrb[67].mxu1 }
 0x22f   : > { %2046 = vst [vmem:[%s3305_s30 + $0x100] sm:$0xff] %v1982_v12  ;;  %v1983_v15 = vadd.f32 %v1827_v13, %v381_v9  ;;  %v390_v9 = vld [vmem:[%s3305_s30 + $0x150] sm:$0xff] }
 0x231   : > { %2047 = vst [vmem:[%s3305_s30 + $0x108] sm:$0xff] %v1983_v15  ;;  %v1542_v16 = vpop.f32.mrb[68].mxu0  ;;  %v391_v15 = vld [vmem:[%s3305_s30 + $0x158] sm:$0xff] }
 0x232   : > { %v1831_v18 = vpop.f32.mrb[68].mxu1  ;;  %v1544_v19 = vpop.f32.mrb[69].mxu0 }
 0x233   : > { %v1832_v20 = vadd.f32 %v1831_v18, %v1542_v16  ;;  %v1833_v21 = vpop.f32.mrb[69].mxu1  ;;  %v1545_v22 = vpop.f32.mrb[70].mxu0 }
 0x234   : > { %v1834_v24 = vpop.f32.mrb[70].mxu1  ;;  %v1547_v25 = vpop.f32.mrb[71].mxu0 }
 0x235   : > { %v1984_v26 = vadd.f32 %v1832_v20, %v382_v17  ;;  %v1835_v27 = vadd.f32 %v1834_v24, %v1545_v22  ;;  %v1836_v28 = vpop.f32.mrb[71].mxu1 }
 0x237   : > { %2048 = vst [vmem:[%s3305_s30 + $0x110] sm:$0xff] %v1984_v26  ;;  %v1985_v29 = vadd.f32 %v1835_v27, %v383_v23  ;;  %v392_v23 = vld [vmem:[%s3305_s30 + $0x160] sm:$0xff] }
 0x239   : > { %2049 = vst [vmem:[%s3305_s30 + $0x118] sm:$0xff] %v1985_v29  ;;  %v1550_v30 = vpop.f32.mrb[72].mxu0  ;;  %v393_v29 = vld [vmem:[%s3305_s30 + $0x168] sm:$0xff] }
 0x23a   : > { %v1839_v32 = vpop.f32.mrb[72].mxu1  ;;  %v1552_v33 = vpop.f32.mrb[73].mxu0 }
 0x23b   : > { %v1840_v34 = vadd.f32 %v1839_v32, %v1550_v30  ;;  %v1841_v35 = vpop.f32.mrb[73].mxu1  ;;  %v1553_v36 = vpop.f32.mrb[74].mxu0 }
 0x23c   : > { %v1842_v38 = vpop.f32.mrb[74].mxu1  ;;  %v1555_v39 = vpop.f32.mrb[75].mxu0 }
 0x23d   : > { %v1986_v40 = vadd.f32 %v1840_v34, %v384_v31  ;;  %v1843_v41 = vadd.f32 %v1842_v38, %v1553_v36  ;;  %v1844_v42 = vpop.f32.mrb[75].mxu1 }
 0x23f   : > { %2050 = vst [vmem:[%s3305_s30 + $0x120] sm:$0xff] %v1986_v40  ;;  %v1987_v43 = vadd.f32 %v1843_v41, %v385_v37  ;;  %v394_v37 = vld [vmem:[%s3305_s30 + $0x170] sm:$0xff] }
 0x241   : > { %2051 = vst [vmem:[%s3305_s30 + $0x128] sm:$0xff] %v1987_v43  ;;  %v1558_v44 = vpop.f32.mrb[76].mxu0  ;;  %v395_v43 = vld [vmem:[%s3305_s30 + $0x178] sm:$0xff] }
 0x242   : > { %v1847_v46 = vpop.f32.mrb[76].mxu1  ;;  %v1560_v47 = vpop.f32.mrb[77].mxu0 }
 0x243   : > { %v1848_v48 = vadd.f32 %v1847_v46, %v1558_v44  ;;  %v1849_v49 = vpop.f32.mrb[77].mxu1  ;;  %v1561_v50 = vpop.f32.mrb[78].mxu0 }
 0x244   : > { %v1850_v52 = vpop.f32.mrb[78].mxu1  ;;  %v1563_v53 = vpop.f32.mrb[79].mxu0 }
 0x245   : > { %v1988_v54 = vadd.f32 %v1848_v48, %v386_v45  ;;  %v1851_v55 = vadd.f32 %v1850_v52, %v1561_v50  ;;  %v1852_v56 = vpop.f32.mrb[79].mxu1 }
 0x247   : > { %2052 = vst [vmem:[%s3305_s30 + $0x130] sm:$0xff] %v1988_v54  ;;  %v1989_v57 = vadd.f32 %v1851_v55, %v387_v51  ;;  %v396_v51 = vld [vmem:[%s3305_s30 + $0x180] sm:$0xff] }
 0x249   : > { %2053 = vst [vmem:[%s3305_s30 + $0x138] sm:$0xff] %v1989_v57  ;;  %v1566_v58 = vpop.f32.mrb[80].mxu0  ;;  %v397_v57 = vld [vmem:[%s3305_s30 + $0x188] sm:$0xff] }
 0x24a   : > { %v1855_v60 = vpop.f32.mrb[80].mxu1  ;;  %v1568_v61 = vpop.f32.mrb[81].mxu0 }
 0x24b   : > { %v1856_v62 = vadd.f32 %v1855_v60, %v1566_v58  ;;  %v1857_v63 = vpop.f32.mrb[81].mxu1  ;;  %v1569_v0 = vpop.f32.mrb[82].mxu0 }
 0x24c   : > { %v1858_v2 = vpop.f32.mrb[82].mxu1  ;;  %v1571_v3 = vpop.f32.mrb[83].mxu0 }
 0x24d   : > { %v1990_v4 = vadd.f32 %v1856_v62, %v388_v59  ;;  %v1859_v5 = vadd.f32 %v1858_v2, %v1569_v0  ;;  %v1860_v6 = vpop.f32.mrb[83].mxu1 }
 0x24f   : > { %2054 = vst [vmem:[%s3305_s30 + $0x140] sm:$0xff] %v1990_v4  ;;  %v1991_v7 = vadd.f32 %v1859_v5, %v389_v1  ;;  %v398_v1 = vld [vmem:[%s3305_s30 + $0x190] sm:$0xff] }
 0x251   : > { %2055 = vst [vmem:[%s3305_s30 + $0x148] sm:$0xff] %v1991_v7  ;;  %v1574_v8 = vpop.f32.mrb[84].mxu0  ;;  %v399_v7 = vld [vmem:[%s3305_s30 + $0x198] sm:$0xff] }
 0x252   : > { %v1863_v10 = vpop.f32.mrb[84].mxu1  ;;  %v1576_v11 = vpop.f32.mrb[85].mxu0 }
 0x253   : > { %v1864_v12 = vadd.f32 %v1863_v10, %v1574_v8  ;;  %v1865_v13 = vpop.f32.mrb[85].mxu1  ;;  %v1577_v14 = vpop.f32.mrb[86].mxu0 }
 0x254   : > { %v1866_v16 = vpop.f32.mrb[86].mxu1  ;;  %v1579_v17 = vpop.f32.mrb[87].mxu0 }
 0x255   : > { %v1992_v18 = vadd.f32 %v1864_v12, %v390_v9  ;;  %v1867_v19 = vadd.f32 %v1866_v16, %v1577_v14  ;;  %v1868_v20 = vpop.f32.mrb[87].mxu1 }
 0x257   : > { %2056 = vst [vmem:[%s3305_s30 + $0x150] sm:$0xff] %v1992_v18  ;;  %v1993_v21 = vadd.f32 %v1867_v19, %v391_v15  ;;  %v400_v15 = vld [vmem:[%s3305_s30 + $0x1a0] sm:$0xff] }
 0x259   : > { %2057 = vst [vmem:[%s3305_s30 + $0x158] sm:$0xff] %v1993_v21  ;;  %v1582_v22 = vpop.f32.mrb[88].mxu0  ;;  %v401_v21 = vld [vmem:[%s3305_s30 + $0x1a8] sm:$0xff] }
 0x25a   : > { %v1871_v24 = vpop.f32.mrb[88].mxu1  ;;  %v1584_v25 = vpop.f32.mrb[89].mxu0 }
 0x25b   : > { %v1872_v26 = vadd.f32 %v1871_v24, %v1582_v22  ;;  %v1873_v27 = vpop.f32.mrb[89].mxu1  ;;  %v1585_v28 = vpop.f32.mrb[90].mxu0 }
 0x25c   : > { %v1874_v30 = vpop.f32.mrb[90].mxu1  ;;  %v1587_v31 = vpop.f32.mrb[91].mxu0 }
 0x25d   : > { %v1994_v32 = vadd.f32 %v1872_v26, %v392_v23  ;;  %v1875_v33 = vadd.f32 %v1874_v30, %v1585_v28  ;;  %v1876_v34 = vpop.f32.mrb[91].mxu1 }
 0x25f   : > { %2058 = vst [vmem:[%s3305_s30 + $0x160] sm:$0xff] %v1994_v32  ;;  %v1995_v35 = vadd.f32 %v1875_v33, %v393_v29  ;;  %v402_v29 = vld [vmem:[%s3305_s30 + $0x1b0] sm:$0xff] }
 0x261   : > { %2059 = vst [vmem:[%s3305_s30 + $0x168] sm:$0xff] %v1995_v35  ;;  %v1590_v36 = vpop.f32.mrb[92].mxu0  ;;  %v403_v35 = vld [vmem:[%s3305_s30 + $0x1b8] sm:$0xff] }
 0x262   : > { %v1879_v38 = vpop.f32.mrb[92].mxu1  ;;  %v1592_v39 = vpop.f32.mrb[93].mxu0 }
 0x263   : > { %v1880_v40 = vadd.f32 %v1879_v38, %v1590_v36  ;;  %v1881_v41 = vpop.f32.mrb[93].mxu1  ;;  %v1593_v42 = vpop.f32.mrb[94].mxu0 }
 0x264   : > { %v1882_v44 = vpop.f32.mrb[94].mxu1  ;;  %v1595_v45 = vpop.f32.mrb[95].mxu0 }
 0x265   : > { %v1996_v46 = vadd.f32 %v1880_v40, %v394_v37  ;;  %v1883_v47 = vadd.f32 %v1882_v44, %v1593_v42  ;;  %v1884_v48 = vpop.f32.mrb[95].mxu1 }
 0x267   : > { %2060 = vst [vmem:[%s3305_s30 + $0x170] sm:$0xff] %v1996_v46  ;;  %v1997_v49 = vadd.f32 %v1883_v47, %v395_v43  ;;  %v404_v43 = vld [vmem:[%s3305_s30 + $0x1c0] sm:$0xff] }
 0x269   : > { %2061 = vst [vmem:[%s3305_s30 + $0x178] sm:$0xff] %v1997_v49  ;;  %v1598_v50 = vpop.f32.mrb[96].mxu0  ;;  %v405_v49 = vld [vmem:[%s3305_s30 + $0x1c8] sm:$0xff] }
 0x26a   : > { %v1887_v52 = vpop.f32.mrb[96].mxu1  ;;  %v1600_v53 = vpop.f32.mrb[97].mxu0 }
 0x26b   : > { %v1888_v54 = vadd.f32 %v1887_v52, %v1598_v50  ;;  %v1889_v55 = vpop.f32.mrb[97].mxu1  ;;  %v1601_v56 = vpop.f32.mrb[98].mxu0 }
 0x26c   : > { %v1890_v58 = vpop.f32.mrb[98].mxu1  ;;  %v1603_v59 = vpop.f32.mrb[99].mxu0 }
 0x26d   : > { %v1998_v60 = vadd.f32 %v1888_v54, %v396_v51  ;;  %v1891_v61 = vadd.f32 %v1890_v58, %v1601_v56  ;;  %v1892_v62 = vpop.f32.mrb[99].mxu1 }
 0x26f   : > { %2062 = vst [vmem:[%s3305_s30 + $0x180] sm:$0xff] %v1998_v60  ;;  %v1999_v63 = vadd.f32 %v1891_v61, %v397_v57  ;;  %v406_v57 = vld [vmem:[%s3305_s30 + $0x1d0] sm:$0xff] }
 0x271   : > { %2063 = vst [vmem:[%s3305_s30 + $0x188] sm:$0xff] %v1999_v63  ;;  %v1606_v0 = vpop.f32.mrb[100].mxu0  ;;  %v407_v63 = vld [vmem:[%s3305_s30 + $0x1d8] sm:$0xff] }
 0x272   : > { %v1895_v2 = vpop.f32.mrb[100].mxu1  ;;  %v1608_v3 = vpop.f32.mrb[101].mxu0 }
 0x273   : > { %v1896_v4 = vadd.f32 %v1895_v2, %v1606_v0  ;;  %v1897_v5 = vpop.f32.mrb[101].mxu1  ;;  %v1609_v6 = vpop.f32.mrb[102].mxu0 }
 0x274   : > { %v1898_v8 = vpop.f32.mrb[102].mxu1  ;;  %v1611_v9 = vpop.f32.mrb[103].mxu0 }
 0x275   : > { %v2000_v10 = vadd.f32 %v1896_v4, %v398_v1  ;;  %v1899_v11 = vadd.f32 %v1898_v8, %v1609_v6  ;;  %v1900_v12 = vpop.f32.mrb[103].mxu1 }
 0x277   : > { %2064 = vst [vmem:[%s3305_s30 + $0x190] sm:$0xff] %v2000_v10  ;;  %v2001_v13 = vadd.f32 %v1899_v11, %v399_v7  ;;  %v408_v7 = vld [vmem:[%s3305_s30 + $0x1e0] sm:$0xff] }
 0x279   : > { %2065 = vst [vmem:[%s3305_s30 + $0x198] sm:$0xff] %v2001_v13  ;;  %v1614_v14 = vpop.f32.mrb[104].mxu0  ;;  %v409_v13 = vld [vmem:[%s3305_s30 + $0x1e8] sm:$0xff] }
 0x27a   : > { %v1903_v16 = vpop.f32.mrb[104].mxu1  ;;  %v1616_v17 = vpop.f32.mrb[105].mxu0 }
 0x27b   : > { %v1904_v18 = vadd.f32 %v1903_v16, %v1614_v14  ;;  %v1905_v19 = vpop.f32.mrb[105].mxu1  ;;  %v1617_v20 = vpop.f32.mrb[106].mxu0 }
 0x27c   : > { %v1906_v22 = vpop.f32.mrb[106].mxu1  ;;  %v1619_v23 = vpop.f32.mrb[107].mxu0 }
 0x27d   : > { %v2002_v24 = vadd.f32 %v1904_v18, %v400_v15  ;;  %v1907_v25 = vadd.f32 %v1906_v22, %v1617_v20  ;;  %v1908_v26 = vpop.f32.mrb[107].mxu1 }
 0x27f   : > { %2066 = vst [vmem:[%s3305_s30 + $0x1a0] sm:$0xff] %v2002_v24  ;;  %v2003_v27 = vadd.f32 %v1907_v25, %v401_v21  ;;  %v410_v21 = vld [vmem:[%s3305_s30 + $0x1f0] sm:$0xff] }
 0x281   : > { %2067 = vst [vmem:[%s3305_s30 + $0x1a8] sm:$0xff] %v2003_v27  ;;  %v1622_v28 = vpop.f32.mrb[108].mxu0  ;;  %v411_v27 = vld [vmem:[%s3305_s30 + $0x1f8] sm:$0xff] }
 0x282   : > { %v1911_v30 = vpop.f32.mrb[108].mxu1  ;;  %v1624_v31 = vpop.f32.mrb[109].mxu0 }
 0x283   : > { %v1912_v32 = vadd.f32 %v1911_v30, %v1622_v28  ;;  %v1913_v33 = vpop.f32.mrb[109].mxu1  ;;  %v1625_v34 = vpop.f32.mrb[110].mxu0 }
 0x284   : > { %v1914_v36 = vpop.f32.mrb[110].mxu1  ;;  %v1627_v37 = vpop.f32.mrb[111].mxu0 }
 0x285   : > { %v2004_v38 = vadd.f32 %v1912_v32, %v402_v29  ;;  %v1915_v39 = vadd.f32 %v1914_v36, %v1625_v34  ;;  %v1916_v40 = vpop.f32.mrb[111].mxu1 }
 0x287   : > { %2068 = vst [vmem:[%s3305_s30 + $0x1b0] sm:$0xff] %v2004_v38  ;;  %v2005_v41 = vadd.f32 %v1915_v39, %v403_v35 }
 0x289   : > { %2069 = vst [vmem:[%s3305_s30 + $0x1b8] sm:$0xff] %v2005_v41  ;;  %v1630_v42 = vpop.f32.mrb[112].mxu0 }
 0x28a   : > { %v1919_v44 = vpop.f32.mrb[112].mxu1  ;;  %v1632_v45 = vpop.f32.mrb[113].mxu0 }
 0x28b   : > { %v1920_v46 = vadd.f32 %v1919_v44, %v1630_v42  ;;  %v1921_v47 = vpop.f32.mrb[113].mxu1  ;;  %v1633_v48 = vpop.f32.mrb[114].mxu0 }
 0x28c   : > { %v1922_v50 = vpop.f32.mrb[114].mxu1  ;;  %v1635_v51 = vpop.f32.mrb[115].mxu0 }
 0x28d   : > { %v2006_v52 = vadd.f32 %v1920_v46, %v404_v43  ;;  %v1923_v53 = vadd.f32 %v1922_v50, %v1633_v48  ;;  %v1924_v54 = vpop.f32.mrb[115].mxu1 }
 0x28f   : > { %2070 = vst [vmem:[%s3305_s30 + $0x1c0] sm:$0xff] %v2006_v52  ;;  %v2007_v55 = vadd.f32 %v1923_v53, %v405_v49 }
 0x291   : > { %2071 = vst [vmem:[%s3305_s30 + $0x1c8] sm:$0xff] %v2007_v55  ;;  %v1638_v56 = vpop.f32.mrb[116].mxu0 }
 0x292   : > { %v1927_v58 = vpop.f32.mrb[116].mxu1  ;;  %v1640_v59 = vpop.f32.mrb[117].mxu0 }
 0x293   : > { %v1928_v60 = vadd.f32 %v1927_v58, %v1638_v56  ;;  %v1929_v61 = vpop.f32.mrb[117].mxu1  ;;  %v1641_v62 = vpop.f32.mrb[118].mxu0 }
 0x294   : > { %v1930_v0 = vpop.f32.mrb[118].mxu1  ;;  %v1643_v1 = vpop.f32.mrb[119].mxu0 }
 0x295   : > { %v2008_v2 = vadd.f32 %v1928_v60, %v406_v57  ;;  %v1931_v3 = vadd.f32 %v1930_v0, %v1641_v62  ;;  %v1932_v4 = vpop.f32.mrb[119].mxu1 }
 0x297   : > { %2072 = vst [vmem:[%s3305_s30 + $0x1d0] sm:$0xff] %v2008_v2  ;;  %v2009_v5 = vadd.f32 %v1931_v3, %v407_v63 }
 0x299   : > { %2073 = vst [vmem:[%s3305_s30 + $0x1d8] sm:$0xff] %v2009_v5  ;;  %v1646_v6 = vpop.f32.mrb[120].mxu0 }
 0x29a   : > { %v1935_v8 = vpop.f32.mrb[120].mxu1  ;;  %v1648_v9 = vpop.f32.mrb[121].mxu0 }
 0x29b   : > { %v1936_v10 = vadd.f32 %v1935_v8, %v1646_v6  ;;  %v1937_v11 = vpop.f32.mrb[121].mxu1  ;;  %v1649_v12 = vpop.f32.mrb[122].mxu0 }
 0x29c   : > { %v1938_v14 = vpop.f32.mrb[122].mxu1  ;;  %v1651_v15 = vpop.f32.mrb[123].mxu0 }
 0x29d   : > { %v2010_v16 = vadd.f32 %v1936_v10, %v408_v7  ;;  %v1939_v17 = vadd.f32 %v1938_v14, %v1649_v12  ;;  %v1940_v18 = vpop.f32.mrb[123].mxu1 }
 0x29f   : > { %2074 = vst [vmem:[%s3305_s30 + $0x1e0] sm:$0xff] %v2010_v16  ;;  %v2011_v19 = vadd.f32 %v1939_v17, %v409_v13 }
 0x2a1   : > { %2075 = vst [vmem:[%s3305_s30 + $0x1e8] sm:$0xff] %v2011_v19  ;;  %v1654_v20 = vpop.f32.mrb[124].mxu0 }
 0x2a2   : > { %v1943_v22 = vpop.f32.mrb[124].mxu1  ;;  %v1656_v23 = vpop.f32.mrb[125].mxu0 }
 0x2a3   : > { %v1944_v24 = vadd.f32 %v1943_v22, %v1654_v20  ;;  %v1945_v25 = vpop.f32.mrb[125].mxu1  ;;  %v1657_v26 = vpop.f32.mrb[126].mxu0 }
 0x2a4   : > { %v1946_v28 = vpop.f32.mrb[126].mxu1  ;;  %v1659_v29 = vpop.f32.mrb[127].mxu0 }
 0x2a5   : > { %v2012_v30 = vadd.f32 %v1944_v24, %v410_v21  ;;  %v1947_v31 = vadd.f32 %v1946_v28, %v1657_v26  ;;  %v1948_v32 = vpop.f32.mrb[127].mxu1 }
 0x2a7   : > { %2076 = vst [vmem:[%s3305_s30 + $0x1f0] sm:$0xff] %v2012_v30  ;;  %v2013_v33 = vadd.f32 %v1947_v31, %v411_v27 }
 0x2a9   : > { %2077 = vst [vmem:[%s3305_s30 + $0x1f8] sm:$0xff] %v2013_v33 }
 0x2aa PF: > { %p2557_p10 = scmp.ne.s32.totalorder %s3062_s1, 1 }
 0x2ab   : > { %v2082_v34 = vld [vmem:[%s3305_s30] sm:$0xff] (!%p2557_p10)  ;;  %v2083_v35 = vld [vmem:[%s3305_s30 + $0x8] sm:$0xff] (!%p2557_p10)  ;;  %v2084_v36 = vld [vmem:[%s3305_s30 + $0x10] sm:$0xff] (!%p2557_p10) }
 0x2ac   : > { %2081 = sbr.rel (%p2557_p10) target bundleno = 718 (0x2ce), region = 44  ;;  %v2146_v37 = vmax.f32 (!%p2557_p10), %v2082_v34, 0.0  ;;  %v2147_v38 = vmax.f32 (!%p2557_p10), %v2083_v35, 0.0  ;;  %v2148_v39 = vmax.f32 (!%p2557_p10), %v2084_v36, 0.0  ;;  %v2085_v40 = vld [vmem:[%s3305_s30 + $0x18] sm:$0xff] (!%p2557_p10)  ;;  %v2086_v41 = vld [vmem:[%s3305_s30 + $0x20] sm:$0xff] (!%p2557_p10) }
 0x2ad   : > { %v2087_v42 = vld [vmem:[%s3305_s30 + $0x28] sm:$0xff] (!%p2557_p10)  ;;  %v2149_v43 = vmax.f32 (!%p2557_p10), %v2085_v40, 0.0  ;;  %v2150_v44 = vmax.f32 (!%p2557_p10), %v2086_v41, 0.0  ;;  %v2088_v46 = vld [vmem:[%s3305_s30 + $0x30] sm:$0xff] (!%p2557_p10)  ;;  %v2089_v47 = vld [vmem:[%s3305_s30 + $0x38] sm:$0xff] (!%p2557_p10) }
 0x2ae   : > { %v2151_v45 = vmax.f32 (!%p2557_p10), %v2087_v42, 0.0  ;;  %v2090_v48 = vld [vmem:[%s3305_s30 + $0x40] sm:$0xff] (!%p2557_p10)  ;;  %2210 = vst [vmem:[%s3305_s30] sm:$0xff] (!%p2557_p10), %v2146_v37  ;;  %2211 = vst [vmem:[%s3305_s30 + $0x8] sm:$0xff] (!%p2557_p10), %v2147_v38  ;;  %v2152_v49 = vmax.f32 (!%p2557_p10), %v2088_v46, 0.0  ;;  %v2153_v50 = vmax.f32 (!%p2557_p10), %v2089_v47, 0.0  ;;  %v2091_v52 = vld [vmem:[%s3305_s30 + $0x48] sm:$0xff] (!%p2557_p10) }
 0x2af   : > { %2212 = vst [vmem:[%s3305_s30 + $0x10] sm:$0xff] (!%p2557_p10), %v2148_v39  ;;  %v2154_v51 = vmax.f32 (!%p2557_p10), %v2090_v48, 0.0  ;;  %v2092_v53 = vld [vmem:[%s3305_s30 + $0x50] sm:$0xff] (!%p2557_p10)  ;;  %v2093_v54 = vld [vmem:[%s3305_s30 + $0x58] sm:$0xff] (!%p2557_p10)  ;;  %2213 = vst [vmem:[%s3305_s30 + $0x18] sm:$0xff] (!%p2557_p10), %v2149_v43  ;;  %v2155_v55 = vmax.f32 (!%p2557_p10), %v2091_v52, 0.0 }
 0x2b0   : > { %2214 = vst [vmem:[%s3305_s30 + $0x20] sm:$0xff] (!%p2557_p10), %v2150_v44  ;;  %2215 = vst [vmem:[%s3305_s30 + $0x28] sm:$0xff] (!%p2557_p10), %v2151_v45  ;;  %v2156_v56 = vmax.f32 (!%p2557_p10), %v2092_v53, 0.0  ;;  %v2157_v57 = vmax.f32 (!%p2557_p10), %v2093_v54, 0.0  ;;  %v2094_v58 = vld [vmem:[%s3305_s30 + $0x60] sm:$0xff] (!%p2557_p10)  ;;  %v2095_v59 = vld [vmem:[%s3305_s30 + $0x68] sm:$0xff] (!%p2557_p10) }
 0x2b1   : > { %v2096_v60 = vld [vmem:[%s3305_s30 + $0x70] sm:$0xff] (!%p2557_p10)  ;;  %2216 = vst [vmem:[%s3305_s30 + $0x30] sm:$0xff] (!%p2557_p10), %v2152_v49  ;;  %2217 = vst [vmem:[%s3305_s30 + $0x38] sm:$0xff] (!%p2557_p10), %v2153_v50  ;;  %v2158_v61 = vmax.f32 (!%p2557_p10), %v2094_v58, 0.0  ;;  %v2159_v62 = vmax.f32 (!%p2557_p10), %v2095_v59, 0.0  ;;  %v2097_v0 = vld [vmem:[%s3305_s30 + $0x78] sm:$0xff] (!%p2557_p10) }
 0x2b2   : > { %2218 = vst [vmem:[%s3305_s30 + $0x40] sm:$0xff] (!%p2557_p10), %v2154_v51  ;;  %v2160_v63 = vmax.f32 (!%p2557_p10), %v2096_v60, 0.0  ;;  %v2098_v1 = vld [vmem:[%s3305_s30 + $0x80] sm:$0xff] (!%p2557_p10)  ;;  %v2099_v2 = vld [vmem:[%s3305_s30 + $0x88] sm:$0xff] (!%p2557_p10)  ;;  %2219 = vst [vmem:[%s3305_s30 + $0x48] sm:$0xff] (!%p2557_p10), %v2155_v55  ;;  %v2161_v3 = vmax.f32 (!%p2557_p10), %v2097_v0, 0.0 }
 0x2b3   : > { %2220 = vst [vmem:[%s3305_s30 + $0x50] sm:$0xff] %v2156_v56  ;;  %2221 = vst [vmem:[%s3305_s30 + $0x58] sm:$0xff] %v2157_v57  ;;  %v2162_v4 = vmax.f32 %v2098_v1, 0.0  ;;  %v2163_v5 = vmax.f32 %v2099_v2, 0.0  ;;  %v2100_v6 = vld [vmem:[%s3305_s30 + $0x90] sm:$0xff]  ;;  %v2101_v7 = vld [vmem:[%s3305_s30 + $0x98] sm:$0xff] }
 0x2b4   : > { %v2102_v8 = vld [vmem:[%s3305_s30 + $0xa0] sm:$0xff]  ;;  %2222 = vst [vmem:[%s3305_s30 + $0x60] sm:$0xff] %v2158_v61  ;;  %2223 = vst [vmem:[%s3305_s30 + $0x68] sm:$0xff] %v2159_v62  ;;  %v2164_v9 = vmax.f32 %v2100_v6, 0.0  ;;  %v2165_v10 = vmax.f32 %v2101_v7, 0.0  ;;  %v2103_v12 = vld [vmem:[%s3305_s30 + $0xa8] sm:$0xff] }
 0x2b5   : > { %2224 = vst [vmem:[%s3305_s30 + $0x70] sm:$0xff] %v2160_v63  ;;  %v2166_v11 = vmax.f32 %v2102_v8, 0.0  ;;  %v2104_v13 = vld [vmem:[%s3305_s30 + $0xb0] sm:$0xff]  ;;  %v2105_v14 = vld [vmem:[%s3305_s30 + $0xb8] sm:$0xff]  ;;  %2225 = vst [vmem:[%s3305_s30 + $0x78] sm:$0xff] %v2161_v3  ;;  %v2167_v15 = vmax.f32 %v2103_v12, 0.0 }
 0x2b6   : > { %2226 = vst [vmem:[%s3305_s30 + $0x80] sm:$0xff] %v2162_v4  ;;  %2227 = vst [vmem:[%s3305_s30 + $0x88] sm:$0xff] %v2163_v5  ;;  %v2168_v16 = vmax.f32 %v2104_v13, 0.0  ;;  %v2169_v17 = vmax.f32 %v2105_v14, 0.0  ;;  %v2106_v18 = vld [vmem:[%s3305_s30 + $0xc0] sm:$0xff]  ;;  %v2107_v19 = vld [vmem:[%s3305_s30 + $0xc8] sm:$0xff] }
 0x2b7   : > { %v2108_v20 = vld [vmem:[%s3305_s30 + $0xd0] sm:$0xff]  ;;  %2228 = vst [vmem:[%s3305_s30 + $0x90] sm:$0xff] %v2164_v9  ;;  %2229 = vst [vmem:[%s3305_s30 + $0x98] sm:$0xff] %v2165_v10  ;;  %v2170_v21 = vmax.f32 %v2106_v18, 0.0  ;;  %v2171_v22 = vmax.f32 %v2107_v19, 0.0  ;;  %v2109_v24 = vld [vmem:[%s3305_s30 + $0xd8] sm:$0xff] }
 0x2b8   : > { %2230 = vst [vmem:[%s3305_s30 + $0xa0] sm:$0xff] %v2166_v11  ;;  %v2172_v23 = vmax.f32 %v2108_v20, 0.0  ;;  %v2110_v25 = vld [vmem:[%s3305_s30 + $0xe0] sm:$0xff]  ;;  %v2111_v26 = vld [vmem:[%s3305_s30 + $0xe8] sm:$0xff]  ;;  %2231 = vst [vmem:[%s3305_s30 + $0xa8] sm:$0xff] %v2167_v15  ;;  %v2173_v27 = vmax.f32 %v2109_v24, 0.0 }
 0x2b9   : > { %2232 = vst [vmem:[%s3305_s30 + $0xb0] sm:$0xff] %v2168_v16  ;;  %2233 = vst [vmem:[%s3305_s30 + $0xb8] sm:$0xff] %v2169_v17  ;;  %v2174_v28 = vmax.f32 %v2110_v25, 0.0  ;;  %v2175_v29 = vmax.f32 %v2111_v26, 0.0  ;;  %v2112_v30 = vld [vmem:[%s3305_s30 + $0xf0] sm:$0xff]  ;;  %v2113_v31 = vld [vmem:[%s3305_s30 + $0xf8] sm:$0xff] }
 0x2ba   : > { %v2114_v32 = vld [vmem:[%s3305_s30 + $0x100] sm:$0xff]  ;;  %2234 = vst [vmem:[%s3305_s30 + $0xc0] sm:$0xff] %v2170_v21  ;;  %2235 = vst [vmem:[%s3305_s30 + $0xc8] sm:$0xff] %v2171_v22  ;;  %v2176_v33 = vmax.f32 %v2112_v30, 0.0  ;;  %v2177_v34 = vmax.f32 %v2113_v31, 0.0  ;;  %v2115_v36 = vld [vmem:[%s3305_s30 + $0x108] sm:$0xff] }
 0x2bb   : > { %2236 = vst [vmem:[%s3305_s30 + $0xd0] sm:$0xff] %v2172_v23  ;;  %v2178_v35 = vmax.f32 %v2114_v32, 0.0  ;;  %v2116_v37 = vld [vmem:[%s3305_s30 + $0x110] sm:$0xff]  ;;  %v2117_v38 = vld [vmem:[%s3305_s30 + $0x118] sm:$0xff]  ;;  %2237 = vst [vmem:[%s3305_s30 + $0xd8] sm:$0xff] %v2173_v27  ;;  %v2179_v39 = vmax.f32 %v2115_v36, 0.0 }
 0x2bc   : > { %2238 = vst [vmem:[%s3305_s30 + $0xe0] sm:$0xff] %v2174_v28  ;;  %2239 = vst [vmem:[%s3305_s30 + $0xe8] sm:$0xff] %v2175_v29  ;;  %v2180_v40 = vmax.f32 %v2116_v37, 0.0  ;;  %v2181_v41 = vmax.f32 %v2117_v38, 0.0  ;;  %v2118_v42 = vld [vmem:[%s3305_s30 + $0x120] sm:$0xff]  ;;  %v2119_v43 = vld [vmem:[%s3305_s30 + $0x128] sm:$0xff] }
 0x2bd   : > { %v2120_v44 = vld [vmem:[%s3305_s30 + $0x130] sm:$0xff]  ;;  %2240 = vst [vmem:[%s3305_s30 + $0xf0] sm:$0xff] %v2176_v33  ;;  %2241 = vst [vmem:[%s3305_s30 + $0xf8] sm:$0xff] %v2177_v34  ;;  %v2182_v45 = vmax.f32 %v2118_v42, 0.0  ;;  %v2183_v46 = vmax.f32 %v2119_v43, 0.0  ;;  %v2121_v48 = vld [vmem:[%s3305_s30 + $0x138] sm:$0xff] }
 0x2be   : > { %2242 = vst [vmem:[%s3305_s30 + $0x100] sm:$0xff] %v2178_v35  ;;  %v2184_v47 = vmax.f32 %v2120_v44, 0.0  ;;  %v2122_v49 = vld [vmem:[%s3305_s30 + $0x140] sm:$0xff]  ;;  %v2123_v50 = vld [vmem:[%s3305_s30 + $0x148] sm:$0xff]  ;;  %2243 = vst [vmem:[%s3305_s30 + $0x108] sm:$0xff] %v2179_v39  ;;  %v2185_v51 = vmax.f32 %v2121_v48, 0.0 }
 0x2bf   : > { %2244 = vst [vmem:[%s3305_s30 + $0x110] sm:$0xff] %v2180_v40  ;;  %2245 = vst [vmem:[%s3305_s30 + $0x118] sm:$0xff] %v2181_v41  ;;  %v2186_v52 = vmax.f32 %v2122_v49, 0.0  ;;  %v2187_v53 = vmax.f32 %v2123_v50, 0.0  ;;  %v2124_v54 = vld [vmem:[%s3305_s30 + $0x150] sm:$0xff]  ;;  %v2125_v55 = vld [vmem:[%s3305_s30 + $0x158] sm:$0xff] }
 0x2c0   : > { %v2126_v56 = vld [vmem:[%s3305_s30 + $0x160] sm:$0xff]  ;;  %2246 = vst [vmem:[%s3305_s30 + $0x120] sm:$0xff] %v2182_v45  ;;  %2247 = vst [vmem:[%s3305_s30 + $0x128] sm:$0xff] %v2183_v46  ;;  %v2188_v57 = vmax.f32 %v2124_v54, 0.0  ;;  %v2189_v58 = vmax.f32 %v2125_v55, 0.0  ;;  %v2127_v60 = vld [vmem:[%s3305_s30 + $0x168] sm:$0xff] }
 0x2c1   : > { %2248 = vst [vmem:[%s3305_s30 + $0x130] sm:$0xff] %v2184_v47  ;;  %v2190_v59 = vmax.f32 %v2126_v56, 0.0  ;;  %v2128_v61 = vld [vmem:[%s3305_s30 + $0x170] sm:$0xff]  ;;  %v2129_v62 = vld [vmem:[%s3305_s30 + $0x178] sm:$0xff]  ;;  %2249 = vst [vmem:[%s3305_s30 + $0x138] sm:$0xff] %v2185_v51  ;;  %v2191_v63 = vmax.f32 %v2127_v60, 0.0 }
 0x2c2   : > { %2250 = vst [vmem:[%s3305_s30 + $0x140] sm:$0xff] %v2186_v52  ;;  %2251 = vst [vmem:[%s3305_s30 + $0x148] sm:$0xff] %v2187_v53  ;;  %v2192_v0 = vmax.f32 %v2128_v61, 0.0  ;;  %v2193_v1 = vmax.f32 %v2129_v62, 0.0  ;;  %v2130_v2 = vld [vmem:[%s3305_s30 + $0x180] sm:$0xff]  ;;  %v2131_v3 = vld [vmem:[%s3305_s30 + $0x188] sm:$0xff] }
 0x2c3   : > { %v2132_v4 = vld [vmem:[%s3305_s30 + $0x190] sm:$0xff]  ;;  %2252 = vst [vmem:[%s3305_s30 + $0x150] sm:$0xff] %v2188_v57  ;;  %2253 = vst [vmem:[%s3305_s30 + $0x158] sm:$0xff] %v2189_v58  ;;  %v2194_v5 = vmax.f32 %v2130_v2, 0.0  ;;  %v2195_v6 = vmax.f32 %v2131_v3, 0.0  ;;  %v2133_v8 = vld [vmem:[%s3305_s30 + $0x198] sm:$0xff] }
 0x2c4   : > { %2254 = vst [vmem:[%s3305_s30 + $0x160] sm:$0xff] %v2190_v59  ;;  %v2196_v7 = vmax.f32 %v2132_v4, 0.0  ;;  %v2134_v9 = vld [vmem:[%s3305_s30 + $0x1a0] sm:$0xff]  ;;  %v2135_v10 = vld [vmem:[%s3305_s30 + $0x1a8] sm:$0xff]  ;;  %2255 = vst [vmem:[%s3305_s30 + $0x168] sm:$0xff] %v2191_v63  ;;  %v2197_v11 = vmax.f32 %v2133_v8, 0.0 }
 0x2c5   : > { %2256 = vst [vmem:[%s3305_s30 + $0x170] sm:$0xff] %v2192_v0  ;;  %2257 = vst [vmem:[%s3305_s30 + $0x178] sm:$0xff] %v2193_v1  ;;  %v2198_v12 = vmax.f32 %v2134_v9, 0.0  ;;  %v2199_v13 = vmax.f32 %v2135_v10, 0.0  ;;  %v2136_v14 = vld [vmem:[%s3305_s30 + $0x1b0] sm:$0xff]  ;;  %v2137_v15 = vld [vmem:[%s3305_s30 + $0x1b8] sm:$0xff] }
 0x2c6   : > { %v2138_v16 = vld [vmem:[%s3305_s30 + $0x1c0] sm:$0xff]  ;;  %2258 = vst [vmem:[%s3305_s30 + $0x180] sm:$0xff] %v2194_v5  ;;  %2259 = vst [vmem:[%s3305_s30 + $0x188] sm:$0xff] %v2195_v6  ;;  %v2200_v17 = vmax.f32 %v2136_v14, 0.0  ;;  %v2201_v18 = vmax.f32 %v2137_v15, 0.0  ;;  %v2139_v20 = vld [vmem:[%s3305_s30 + $0x1c8] sm:$0xff] }
 0x2c7   : > { %2260 = vst [vmem:[%s3305_s30 + $0x190] sm:$0xff] %v2196_v7  ;;  %v2202_v19 = vmax.f32 %v2138_v16, 0.0  ;;  %v2140_v21 = vld [vmem:[%s3305_s30 + $0x1d0] sm:$0xff]  ;;  %v2141_v22 = vld [vmem:[%s3305_s30 + $0x1d8] sm:$0xff]  ;;  %2261 = vst [vmem:[%s3305_s30 + $0x198] sm:$0xff] %v2197_v11  ;;  %v2203_v23 = vmax.f32 %v2139_v20, 0.0 }
 0x2c8   : > { %2262 = vst [vmem:[%s3305_s30 + $0x1a0] sm:$0xff] %v2198_v12  ;;  %2263 = vst [vmem:[%s3305_s30 + $0x1a8] sm:$0xff] %v2199_v13  ;;  %v2204_v24 = vmax.f32 %v2140_v21, 0.0  ;;  %v2205_v25 = vmax.f32 %v2141_v22, 0.0  ;;  %v2142_v26 = vld [vmem:[%s3305_s30 + $0x1e0] sm:$0xff]  ;;  %v2143_v27 = vld [vmem:[%s3305_s30 + $0x1e8] sm:$0xff] }
 0x2c9   : > { %v2144_v28 = vld [vmem:[%s3305_s30 + $0x1f0] sm:$0xff]  ;;  %2264 = vst [vmem:[%s3305_s30 + $0x1b0] sm:$0xff] %v2200_v17  ;;  %2265 = vst [vmem:[%s3305_s30 + $0x1b8] sm:$0xff] %v2201_v18  ;;  %v2206_v29 = vmax.f32 %v2142_v26, 0.0  ;;  %v2207_v30 = vmax.f32 %v2143_v27, 0.0  ;;  %v2145_v32 = vld [vmem:[%s3305_s30 + $0x1f8] sm:$0xff] }
 0x2ca   : > { %2266 = vst [vmem:[%s3305_s30 + $0x1c0] sm:$0xff] %v2202_v19  ;;  %v2208_v31 = vmax.f32 %v2144_v28, 0.0  ;;  %2267 = vst [vmem:[%s3305_s30 + $0x1c8] sm:$0xff] %v2203_v23  ;;  %v2209_v33 = vmax.f32 %v2145_v32, 0.0 }
 0x2cb   : > { %2268 = vst [vmem:[%s3305_s30 + $0x1d0] sm:$0xff] %v2204_v24  ;;  %2269 = vst [vmem:[%s3305_s30 + $0x1d8] sm:$0xff] %v2205_v25 }
 0x2cc   : > { %2270 = vst [vmem:[%s3305_s30 + $0x1e0] sm:$0xff] %v2206_v29  ;;  %2271 = vst [vmem:[%s3305_s30 + $0x1e8] sm:$0xff] %v2207_v30 }
 0x2cd   : > { %2272 = vst [vmem:[%s3305_s30 + $0x1f0] sm:$0xff] %v2208_v31  ;;  %2273 = vst [vmem:[%s3305_s30 + $0x1f8] sm:$0xff] %v2209_v33 }
 0x2ce PF: > { %s2564_s1 = sshll.u32 %s3066_s14, 13  ;;  %s2288_s23 = sshll.u32 %s3305_s30, 4  ;;  %s3901_s23 = int_to_ptr.vmem [resolvable:$true] %s2288_s23 }
 0x2cf   : > { %s3898_s18 = scalar_lea.hbm %s3969_s4, %s2564_s1  ;;  %s3905_s13 = scalar_lea.sflag [#allocation7], %s193_s20 }
 0x2d0   : > { %s2954_s25 = scalar_lea.vmem %s3901_s23, 8192  ;;  %p3988_p1 = scmp.ne.s32.totalorder %s3982_s6, 0 }
 0x2d1   : > { %p2955_p11 = scmp.ne.s32.totalorder %s3901_s23, %s2954_s25  ;;  %s3088_s14 = smov [#allocation8]  }
 0x2d2   : > { %s2958_s29 = sshll.u32 %s3088_s14, 4  ;;  %s2959_s29 = int_to_ptr.vmem [resolvable:$false] %s2958_s29 }
 0x2d3   : > { %p2956_p3 = pnand %p2955_p11, %p3988_p1  ;;  %s2960_s7 = scalar_lea.vmem %s2959_s29, 16384 }
 0x2d4   : > { %p2961_p8 = scmp.lt.s32.totalorder %s3901_s23, %s2959_s29  ;;  %p2962_p0 = scmp.lt.s32.totalorder %s2960_s7, %s2954_s25 }
 0x2d5   : > { %p2957_p13 = pneg %p2956_p3 }
 0x2d6   : > { %p2963_p2 = por %p2962_p0, %p2961_p8 }
 0x2d8   : > { %p2964_p6 = pnand %p2963_p2, %p2957_p13 }
 0x2da   : > { %2967 = shalt.err (!%p2964_p6)
}
 0x2db   : > { %s2968_s20 = scalar_lea.hbm %s3898_s18, 8192  ;;  %s2972_s24 = scalar_lea.hbm %s3969_s4, 16384 }
 0x2dc   : > { %p2969_p7 = scmp.ne.s32.totalorder %s3898_s18, %s2968_s20  ;;  %p2973_p4 = scmp.lt.u32.totalorder %s3898_s18, %s3969_s4 }
 0x2dd   : > { %p2974_p5 = scmp.lt.u32.totalorder %s2972_s24, %s2968_s20  ;;  %p2976_p11 = scmp.lt.u32.totalorder %s2968_s20, %s3898_s18 }
 0x2de   : > { %p2970_p9 = pnand %p2969_p7, %p3988_p1 }
 0x2df   : > { %p2975_p10 = por %p2974_p5, %p2973_p4 }
 0x2e0   : > { %p2971_p12 = pneg %p2970_p9 }
 0x2e1   : > { %p2977_p3 = por %p2976_p11, %p2975_p10 }
 0x2e3   : > { %p2978_p13 = pnand %p2977_p3, %p2971_p12 }
 0x2e5   : > { %2981 = shalt.err (!%p2978_p13)
}
 0x2e6   : > { %s3089_s26 = smov 128   ;;  %s3090_s21 = smov 8  }
 0x2e7   : > { %2569 = dma.vmem_to_hbm [thread:$0]  (%p3988_p1), %s3901_s23, 8192, %s3898_s18, %s3905_s13, %s3089_s26, %s3089_s26, %s3090_s21  }
 0x2e8 PF: > { %p2582_p8 = scmp.ge.s32.totalorder %s3078_s17, 2  ;;  %s2303_s19 = sand.u32 1, %s3038_s0  }
 0x2e9   : > { %p3989_p0 = scmp.ne.s32.totalorder %s3983_s8, 0  ;;  %s2304_s1 = scalar_lea.sflag [#allocation7], %s2303_s19 }
 0x2eb   : > { %p2578_p2 = pnand %p2582_p8, %p3989_p0 }
 0x2ed   : > { %3033 = dma.done.wait (!%p2578_p2), %s2304_s1, 8192  }
 0x2ee   : > { %3035 = vsyncadd (!%p2578_p2), %s2304_s1, 4294959104  ;;  %s26_s17 = sadd.s32 1, %s3078_s17   ;;  %s3990_s6 = sld [smem:[#allocation14_spill]] }
 0x2ef   : > { %p23_p6 = scmp.ge.s32.totalorder %s26_s17, 6   ;;  %s3991_s13 = sld [smem:[#allocation18_spill]] }
 0x2f0   : > { %s3992_s1 = sld [smem:[#allocation15_spill]]  ;;  %s3993_s15 = sld [smem:[#allocation16_spill]] }
 0x2f1   : > { %s3994_s28 = sld [smem:[#allocation17_spill]]  ;;  %s3995_s0 = smov %s3042_s9 }
 0x2f2   : > { %s3996_s9 = smov %s3046_s10  ;;  %s3997_s10 = smov %s3221_s5 }
 0x2f3   : > { %s3998_s11 = smov %s3054_s12  ;;  %s4000_s14 = smov %s3074_s16 }
 0x2f4   : > { %s3999_s12 = smov %s3990_s6  ;;  %25 = sbr.rel (!%p23_p6) target bundleno = 28 (0x1c), region = 86 }
 0x2f7   : > { %s4001_s16 = smov %s3994_s28 }
 0x2fb   :  { %2309 = vsyncpa [#allocation6], 1 }
 0x2fc   :  { %2311 = vsyncpa [#allocation6 + $0x1], 1 }
 0x2fd   :  { %2312 = vsyncpa [#allocation7], 1 }
 0x2fe   :  { %2314 = vsyncpa [#allocation7 + $0x1], 1 }

</bundles_post_ra>
